<compile_context>
chip_gen: v6e
topology: v6e:2x2x1
jax: 0.10.0
libtpu: 0.0.40
codegen_flags: <defaults>
</compile_context>

<pallas_src>
import functools

import jax
import jax.numpy as jnp
from jax import lax
from jax.experimental import pallas as pl
from jax.experimental.pallas import tpu as pltpu

# one batch element per grid step; batch axis is embarrassingly parallel
PARALLEL_BATCH = pltpu.CompilerParams(dimension_semantics=("parallel",))


# ----------------------------------------------------------------------------
# Pallas kernels (one batch element per invocation; batch dim squeezed by BlockSpec)
# ----------------------------------------------------------------------------
def _conv3x3_bn_kernel(x_ref, w_ref, scale_ref, bias_ref, o_ref, *, relu):
    """3x3 VALID conv + folded BN (+ optional ReLU), as a single im2col matmul.

    x: (H, W, Cin) f32, w: (9*Cin, Cout) bf16, scale/bias: (1, Cout) f32.
    """
    H, W, Cin = x_ref.shape
    Cout = w_ref.shape[-1]
    Ho, Wo = H - 2, W - 2

    x = x_ref[...]
    # im2col: concatenate the 9 shifted taps along the channel/lane axis -> K = 9*Cin,
    # then a single MXU dot (instead of 9 K=Cin dots).
    taps = [x[di:di + Ho, dj:dj + Wo, :] for di in range(3) for dj in range(3)]
    patch = jnp.concatenate(taps, axis=-1).reshape(Ho * Wo, 9 * Cin)

    y = jnp.dot(patch.astype(jnp.bfloat16), w_ref[...],
                preferred_element_type=jnp.float32)          # bf16 x bf16 -> f32 acc
    y = y * scale_ref[...] + bias_ref[...]                   # folded BN (f32, VPU)
    if relu:
        y = jnp.maximum(y, 0.0)
    o_ref[...] = y.reshape(Ho, Wo, Cout)


def _xcorr_head_kernel(fx_ref, fz_ref, w_ref, b_ref, o_ref, *, stride):
    """Fused depthwise cross-correlation + 1x1 head projections.

    fx: (Hx, Wx, 2C) = [cls_x | reg_x], fz: (Hz, Wz, 2C) = [cls_z | reg_z].
    w:  (2C, 6) block-diagonal head weight  (cls_out -> cols 0:2, reg_out -> cols 2:6).
    Output (Ho, Wo, 6): [cls_score, ctr_score, bbox(4)=exp(.)*stride].
    """
    Hx, Wx, C2 = fx_ref.shape
    Hz, Wz, _ = fz_ref.shape
    Ho, Wo = Hx - Hz + 1, Wx - Wz + 1
    n_out = w_ref.shape[-1]

    fx = fx_ref[...]
    fz = fz_ref[...]

    # depthwise xcorr over all 2C channels at once (f32 MAC on the VPU)
    acc = jnp.zeros((Ho, Wo, C2), jnp.float32)
    for u in range(Hz):
        for v in range(Wz):
            acc = acc + fx[u:u + Ho, v:v + Wo, :] * fz[u:u + 1, v:v + 1, :]

    # head: single small projection (kept f32; K=2C is tiny, accuracy matters for exp path)
    y = jnp.dot(acc.reshape(Ho * Wo, C2), w_ref[...],
                preferred_element_type=jnp.float32) + b_ref[...]

    # channels >= 2 are the bbox branch: exp(.) * total_stride
    chan = lax.broadcasted_iota(jnp.int32, (1, n_out), 1)
    out = jnp.where(chan >= 2, jnp.exp(y) * stride, y)
    o_ref[...] = out.reshape(Ho, Wo, n_out)


# ----------------------------------------------------------------------------
# Wrappers (NCHW <-> NHWC glue + pallas_call with batch grid)
# ----------------------------------------------------------------------------
def nchw_to_nhwc(x):
    return jnp.transpose(x, (0, 2, 3, 1))


def nhwc_to_nchw(x):
    return jnp.transpose(x, (0, 3, 1, 2))


def conv3x3_bn(x_nhwc, p, relu=False):
    B, H, W, Cin = x_nhwc.shape
    Cout = p["w"].shape[-1]
    Ho, Wo = H - 2, W - 2
    return pl.pallas_call(
        functools.partial(_conv3x3_bn_kernel, relu=relu),
        grid=(B,),
        out_shape=jax.ShapeDtypeStruct((B, Ho, Wo, Cout), jnp.float32),
        in_specs=[
            pl.BlockSpec((None, H, W, Cin), lambda b: (b, 0, 0, 0)),
            pl.BlockSpec((9 * Cin, Cout), lambda b: (0, 0)),
            pl.BlockSpec((1, Cout), lambda b: (0, 0)),
            pl.BlockSpec((1, Cout), lambda b: (0, 0)),
        ],
        out_specs=pl.BlockSpec((None, Ho, Wo, Cout), lambda b: (b, 0, 0, 0)),
        compiler_params=PARALLEL_BATCH,
    )(x_nhwc, p["w"], p["scale"], p["bias"])


def xcorr_head(fx_adj, fz_adj, w_head, b_head, stride):
    B, Hx, Wx, C2 = fx_adj.shape
    _, Hz, Wz, _ = fz_adj.shape
    Ho, Wo = Hx - Hz + 1, Wx - Wz + 1
    n_out = w_head.shape[-1]
    return pl.pallas_call(
        functools.partial(_xcorr_head_kernel, stride=stride),
        grid=(B,),
        out_shape=jax.ShapeDtypeStruct((B, Ho, Wo, n_out), jnp.float32),
        in_specs=[
            pl.BlockSpec((None, Hx, Wx, C2), lambda b: (b, 0, 0, 0)),
            pl.BlockSpec((None, Hz, Wz, C2), lambda b: (b, 0, 0, 0)),
            pl.BlockSpec((C2, n_out), lambda b: (0, 0)),
            pl.BlockSpec((1, n_out), lambda b: (0, 0)),
        ],
        out_specs=pl.BlockSpec((None, Ho, Wo, n_out), lambda b: (b, 0, 0, 0)),
        compiler_params=PARALLEL_BATCH,
    )(fx_adj, fz_adj, w_head, b_head)


# ----------------------------------------------------------------------------
# Parameters (deterministic synthetic init; BN folded into scale/bias)
# ----------------------------------------------------------------------------
def _conv_bn_params(key, cin, cout):
    k1, k2, k3 = jax.random.split(key, 3)
    w = 0.05 * jax.random.normal(k1, (9, cin, cout), jnp.float32)
    gamma = 1.0 + 0.1 * jax.random.normal(k2, (cout,), jnp.float32)
    beta = 0.1 * jax.random.normal(k3, (cout,), jnp.float32)
    mean = jnp.zeros((cout,), jnp.float32)
    var = jnp.ones((cout,), jnp.float32)
    scale = gamma / jnp.sqrt(var + 1e-5)
    bias = beta - mean * scale
    return {
        "w": w.reshape(9 * cin, cout).astype(jnp.bfloat16),   # im2col layout, bf16 MXU operand
        "scale": scale.reshape(1, cout),
        "bias": bias.reshape(1, cout),
    }


def init_params(key, c_img=3, c_feat=32):
    ks = jax.random.split(key, 8)
    return {
        "backbone": _conv_bn_params(ks[0], c_img, c_feat),
        "cls_x": _conv_bn_params(ks[1], c_feat, c_feat),
        "cls_z": _conv_bn_params(ks[2], c_feat, c_feat),
        "reg_x": _conv_bn_params(ks[3], c_feat, c_feat),
        "reg_z": _conv_bn_params(ks[4], c_feat, c_feat),
        "head_cls": {"w": 0.05 * jax.random.normal(ks[5], (c_feat, 1), jnp.float32),
                     "b": jnp.zeros((1, 1), jnp.float32)},
        "head_ctr": {"w": 0.05 * jax.random.normal(ks[6], (c_feat, 1), jnp.float32),
                     "b": jnp.zeros((1, 1), jnp.float32)},
        "head_reg": {"w": 0.05 * jax.random.normal(ks[7], (c_feat, 4), jnp.float32),
                     "b": jnp.zeros((1, 4), jnp.float32)},
    }


# ----------------------------------------------------------------------------
# SiamTrack model (mirrors the PyTorch module's phases)
# ----------------------------------------------------------------------------
class SiamTrackPallas:
    # TODO(synk): AlexNet backbone internals are not in the source spec; stand-in is a single
    #             3x3 conv + folded BN + ReLU (Pallas im2col conv kernel).
    # TODO(synk): DenseboxHead conv towers are not in the source spec; head here is the fused
    #             1x1 projections (cls_score, ctr_score, bbox = exp(.)*total_stride).
    def __init__(self, params, total_stride=8.0):
        self.params = params
        self.total_stride = total_stride
        p = params
        C = p["head_cls"]["w"].shape[0]
        self.c_feat = C

        # Fuse cls/reg adjust convs: one conv with concatenated Cout reads f once.
        def fuse_adjust(a, b):
            return {"w": jnp.concatenate([a["w"], b["w"]], axis=1),
                    "scale": jnp.concatenate([a["scale"], b["scale"]], axis=1),
                    "bias": jnp.concatenate([a["bias"], b["bias"]], axis=1)}

        self.adjust_x = fuse_adjust(p["cls_x"], p["reg_x"])   # channels [cls_x | reg_x]
        self.adjust_z = fuse_adjust(p["cls_z"], p["reg_z"])   # channels [cls_z | reg_z]

        # Fuse the three 1x1 heads into one block-diagonal (2C, 6) projection:
        # rows 0:C (cls_out) -> cols 0:2 (cls, ctr); rows C:2C (reg_out) -> cols 2:6 (bbox).
        w_head = jnp.zeros((2 * C, 6), jnp.float32)
        w_head = w_head.at[:C, 0:1].set(p["head_cls"]["w"])
        w_head = w_head.at[:C, 1:2].set(p["head_ctr"]["w"])
        w_head = w_head.at[C:, 2:6].set(p["head_reg"]["w"])
        self.w_head = w_head
        self.b_head = jnp.concatenate(
            [p["head_cls"]["b"], p["head_ctr"]["b"], p["head_reg"]["b"]], axis=1)

    def __call__(self, *args, phase=None):
        if phase is None:
            phase = "train"
        if phase == "train":
            return self.train_forward(args[0])
        elif phase == "template":
            return self.get_feature(args[0])
        elif phase == "track":
            search_image, cls_z, reg_z = args
            return self.track_forward(search_image, cls_z, reg_z)
        else:
            raise ValueError("Phase non-implemented.")

    # backbone / adjust convs return NHWC features
    def _backbone(self, img_nchw):
        return conv3x3_bn(nchw_to_nhwc(img_nchw), self.params["backbone"], relu=True)

    def _predict(self, fx_adj, fz_adj):
        out = xcorr_head(fx_adj, fz_adj, self.w_head, self.b_head, self.total_stride)
        # NCHW conversion happens once, outside the kernels.
        cls_score = nhwc_to_nchw(out[..., 0:1])
        ctr_score = nhwc_to_nchw(out[..., 1:2])
        bbox = nhwc_to_nchw(out[..., 2:6])
        return dict(cls_score=cls_score, ctr_score=ctr_score, bbox=bbox)

    def train_forward(self, training_data):
        f_x = self._backbone(training_data["search_image"])
        f_z = self._backbone(training_data["template_image"])
        fx_adj = conv3x3_bn(f_x, self.adjust_x, relu=False)   # [cls_x | reg_x]
        fz_adj = conv3x3_bn(f_z, self.adjust_z, relu=False)   # [cls_z | reg_z]
        return self._predict(fx_adj, fz_adj)

    def get_feature(self, template_image):
        f_z = self._backbone(template_image)
        fz_adj = conv3x3_bn(f_z, self.adjust_z, relu=False)
        # Template features kept NHWC (no NCHW round-trip between 'template' and 'track').
        C = self.c_feat
        return fz_adj[..., :C], fz_adj[..., C:]               # (cls_z, reg_z) NHWC

    def track_forward(self, search_image, cls_z, reg_z):
        f_x = self._backbone(search_image)
        fx_adj = conv3x3_bn(f_x, self.adjust_x, relu=False)
        fz_adj = jnp.concatenate([cls_z, reg_z], axis=-1)     # NHWC template features
        return self._predict(fx_adj, fz_adj)


# ----------------------------------------------------------------------------
# Pure-JAX (XLA) reference for correctness check
# ----------------------------------------------------------------------------
def _ref_conv3x3_bn(x_nchw, p, relu):
    w = p["w"].astype(jnp.float32)
    cout = w.shape[-1]
    cin = w.shape[0] // 9
    w = w.reshape(3, 3, cin, cout).transpose(3, 2, 0, 1)      # OIHW
    y = lax.conv_general_dilated(x_nchw, w, (1, 1), "VALID",
                                 dimension_numbers=("NCHW", "OIHW", "NCHW"))
    y = y * p["scale"].reshape(1, cout, 1, 1) + p["bias"].reshape(1, cout, 1, 1)
    return jnp.maximum(y, 0.0) if relu else y


def _ref_dw_xcorr(x, z):
    B, C, Hz, Wz = z.shape
    outs = []
    for b in range(B):
        k = z[b].reshape(C, 1, Hz, Wz)
        outs.append(lax.conv_general_dilated(x[b:b + 1], k, (1, 1), "VALID",
                                             dimension_numbers=("NCHW", "OIHW", "NCHW"),
                                             feature_group_count=C))
    return jnp.concatenate(outs, axis=0)


def _ref_forward(params, training_data, total_stride=8.0):
    f_x = _ref_conv3x3_bn(training_data["search_image"], params["backbone"], True)
    f_z = _ref_conv3x3_bn(training_data["template_image"], params["backbone"], True)
    cls_x = _ref_conv3x3_bn(f_x, params["cls_x"], False)
    cls_z = _ref_conv3x3_bn(f_z, params["cls_z"], False)
    reg_x = _ref_conv3x3_bn(f_x, params["reg_x"], False)
    reg_z = _ref_conv3x3_bn(f_z, params["reg_z"], False)
    cls_out = _ref_dw_xcorr(cls_x, cls_z)
    reg_out = _ref_dw_xcorr(reg_x, reg_z)

    def proj(x, p):
        return jnp.einsum("bchw,cd->bdhw", x, p["w"]) + p["b"].reshape(1, -1, 1, 1)

    return dict(cls_score=proj(cls_out, params["head_cls"]),
                ctr_score=proj(cls_out, params["head_ctr"]),
                bbox=jnp.exp(proj(reg_out, params["head_reg"])) * total_stride)


# ----------------------------------------------------------------------------
if __name__ == "__main__":
    key = jax.random.PRNGKey(0)
    kp, kt, ks = jax.random.split(key, 3)

    params = init_params(kp)
    model = SiamTrackPallas(params)

    template_image = jax.random.normal(kt, (2, 3, 10, 10), jnp.float32)  # NCHW
    search_image = jax.random.normal(ks, (2, 3, 16, 16), jnp.float32)    # NCHW
    training_data = {"template_image": template_image, "search_image": search_image}

    # phase='train'
    out = model(training_data, phase="train")
    out = jax.tree_util.tree_map(lambda a: a.block_until_ready(), out)

    # phases 'template' + 'track' should reproduce the train-phase outputs
    cls_z_feat, reg_z_feat = model(template_image, phase="template")    # NHWC features
    out_trk = model(search_image, cls_z_feat, reg_z_feat, phase="track")
    out_trk = jax.tree_util.tree_map(lambda a: a.block_until_ready(), out_trk)

    ref = _ref_forward(params, training_data)
    for name in ("cls_score", "ctr_score", "bbox"):
        assert out[name].shape == ref[name].shape, name
        assert jnp.allclose(out[name], ref[name], rtol=2e-2, atol=2e-2), name
        assert jnp.allclose(out[name], out_trk[name], rtol=2e-2, atol=2e-2), name

    print("KERNEL_OK")
</pallas_src>

<mosaic_0001>
module attributes {stable_mosaic.version = 11 : i64} {
  func.func @_conv3x3_bn_kernel(%arg0: i32, %arg1: memref<1x16x16x3xf32, #tpu.memory_space<vmem>>, %arg2: memref<27x32xbf16, #tpu.memory_space<vmem>>, %arg3: memref<1x32xf32, #tpu.memory_space<vmem>>, %arg4: memref<1x32xf32, #tpu.memory_space<vmem>>, %arg5: memref<1x14x14x32xf32, #tpu.memory_space<vmem>>) attributes {dimension_semantics = [#tpu.dimension_semantics<parallel>], iteration_bounds = array<i64: 2>, scalar_prefetch = 0 : i64, scratch_operands = 0 : i64, tpu.core_type = #tpu.core_type<tc>, window_params = [{transform_indices = @transform_0, window_bounds = array<i64: 1, 16, 16, 3>}, {pipeline_mode = #tpu.pipeline_mode<synchronous>, transform_indices = @transform_1, window_bounds = array<i64: 27, 32>}, {pipeline_mode = #tpu.pipeline_mode<synchronous>, transform_indices = @transform_2, window_bounds = array<i64: 1, 32>}, {pipeline_mode = #tpu.pipeline_mode<synchronous>, transform_indices = @transform_3, window_bounds = array<i64: 1, 32>}, {transform_indices = @transform_4, window_bounds = array<i64: 1, 14, 14, 32>}]} {
    %c0 = arith.constant 0 : index
    %c0_0 = arith.constant 0 : index
    %c0_1 = arith.constant 0 : index
    %c0_2 = arith.constant 0 : index
    %0 = vector.load %arg1[%c0, %c0_0, %c0_1, %c0_2] : memref<1x16x16x3xf32, #tpu.memory_space<vmem>>, vector<1x16x16x3xf32>
    %1 = vector.shape_cast %0 : vector<1x16x16x3xf32> to vector<16x16x3xf32>
    %2 = vector.extract_strided_slice %1 {offsets = [0, 0, 0], sizes = [14, 14, 3], strides = [1, 1, 1]} : vector<16x16x3xf32> to vector<14x14x3xf32>
    %3 = vector.extract_strided_slice %1 {offsets = [0, 1, 0], sizes = [14, 14, 3], strides = [1, 1, 1]} : vector<16x16x3xf32> to vector<14x14x3xf32>
    %4 = vector.extract_strided_slice %1 {offsets = [0, 2, 0], sizes = [14, 14, 3], strides = [1, 1, 1]} : vector<16x16x3xf32> to vector<14x14x3xf32>
    %5 = vector.extract_strided_slice %1 {offsets = [1, 0, 0], sizes = [14, 14, 3], strides = [1, 1, 1]} : vector<16x16x3xf32> to vector<14x14x3xf32>
    %6 = vector.extract_strided_slice %1 {offsets = [1, 1, 0], sizes = [14, 14, 3], strides = [1, 1, 1]} : vector<16x16x3xf32> to vector<14x14x3xf32>
    %7 = vector.extract_strided_slice %1 {offsets = [1, 2, 0], sizes = [14, 14, 3], strides = [1, 1, 1]} : vector<16x16x3xf32> to vector<14x14x3xf32>
    %8 = vector.extract_strided_slice %1 {offsets = [2, 0, 0], sizes = [14, 14, 3], strides = [1, 1, 1]} : vector<16x16x3xf32> to vector<14x14x3xf32>
    %9 = vector.extract_strided_slice %1 {offsets = [2, 1, 0], sizes = [14, 14, 3], strides = [1, 1, 1]} : vector<16x16x3xf32> to vector<14x14x3xf32>
    %10 = vector.extract_strided_slice %1 {offsets = [2, 2, 0], sizes = [14, 14, 3], strides = [1, 1, 1]} : vector<16x16x3xf32> to vector<14x14x3xf32>
    %11 = tpu.concatenate %2, %3, %4, %5, %6, %7, %8, %9, %10 in 2 : vector<14x14x3xf32>, vector<14x14x3xf32>, vector<14x14x3xf32>, vector<14x14x3xf32>, vector<14x14x3xf32>, vector<14x14x3xf32>, vector<14x14x3xf32>, vector<14x14x3xf32>, vector<14x14x3xf32> -> vector<14x14x27xf32>
    %12 = vector.shape_cast %11 : vector<14x14x27xf32> to vector<196x27xf32>
    %13 = arith.truncf %12 : vector<196x27xf32> to vector<196x27xbf16>
    %c0_3 = arith.constant 0 : index
    %c0_4 = arith.constant 0 : index
    %14 = vector.load %arg2[%c0_3, %c0_4] : memref<27x32xbf16, #tpu.memory_space<vmem>>, vector<27x32xbf16>
    %cst = arith.constant dense<0.000000e+00> : vector<196x32xf32>
    %15 = tpu.matmul %13, %14, %cst {dimension_numbers = #tpu.dot_dimension_numbers<[1], [0], [0], [1], [0, 0, 1, 1], [], []>} : vector<196x27xbf16>, vector<27x32xbf16>, vector<196x32xf32> -> vector<196x32xf32>
    %c0_5 = arith.constant 0 : index
    %c0_6 = arith.constant 0 : index
    %16 = vector.load %arg3[%c0_5, %c0_6] : memref<1x32xf32, #tpu.memory_space<vmem>>, vector<1x32xf32>
    %17 = vector.broadcast %16 : vector<1x32xf32> to vector<196x32xf32>
    %18 = arith.mulf %15, %17 : vector<196x32xf32>
    %c0_7 = arith.constant 0 : index
    %c0_8 = arith.constant 0 : index
    %19 = vector.load %arg4[%c0_7, %c0_8] : memref<1x32xf32, #tpu.memory_space<vmem>>, vector<1x32xf32>
    %20 = vector.broadcast %19 : vector<1x32xf32> to vector<196x32xf32>
    %21 = arith.addf %18, %20 : vector<196x32xf32>
    %cst_9 = arith.constant 0.000000e+00 : f32
    %22 = vector.broadcast %cst_9 : f32 to vector<196x32xf32>
    %23 = arith.maximumf %21, %22 : vector<196x32xf32>
    %24 = vector.shape_cast %23 : vector<196x32xf32> to vector<14x14x32xf32>
    %c0_10 = arith.constant 0 : index
    %c0_11 = arith.constant 0 : index
    %c0_12 = arith.constant 0 : index
    %c0_13 = arith.constant 0 : index
    %25 = vector.load %arg5[%c0_10, %c0_11, %c0_12, %c0_13] : memref<1x14x14x32xf32, #tpu.memory_space<vmem>>, vector<1x14x14x32xf32>
    %26 = vector.shape_cast %25 : vector<1x14x14x32xf32> to vector<14x14x32xf32>
    %27 = vector.shape_cast %24 : vector<14x14x32xf32> to vector<1x14x14x32xf32>
    tpu.vector_store %arg5[%c0_10, %c0_11, %c0_12, %c0_13], %27 {strides = array<i32>} : memref<1x14x14x32xf32, #tpu.memory_space<vmem>>, vector<1x14x14x32xf32>,
    return
  }
  func.func @transform_0(%arg0: i32) -> (i32, i32, i32, i32) {
    %c0_i32 = arith.constant 0 : i32
    %c0_i32_0 = arith.constant 0 : i32
    %c0_i32_1 = arith.constant 0 : i32
    %c0_i32_2 = arith.constant 0 : i32
    return %arg0, %c0_i32, %c0_i32_0, %c0_i32_1 : i32, i32, i32, i32
  }
  func.func @transform_1(%arg0: i32) -> (i32, i32) {
    %c0_i32 = arith.constant 0 : i32
    %c0_i32_0 = arith.constant 0 : i32
    %c0_i32_1 = arith.constant 0 : i32
    return %c0_i32, %c0_i32_0 : i32, i32
  }
  func.func @transform_2(%arg0: i32) -> (i32, i32) {
    %c0_i32 = arith.constant 0 : i32
    %c0_i32_0 = arith.constant 0 : i32
    %c0_i32_1 = arith.constant 0 : i32
    return %c0_i32, %c0_i32_0 : i32, i32
  }
  func.func @transform_3(%arg0: i32) -> (i32, i32) {
    %c0_i32 = arith.constant 0 : i32
    %c0_i32_0 = arith.constant 0 : i32
    %c0_i32_1 = arith.constant 0 : i32
    return %c0_i32, %c0_i32_0 : i32, i32
  }
  func.func @transform_4(%arg0: i32) -> (i32, i32, i32, i32) {
    %c0_i32 = arith.constant 0 : i32
    %c0_i32_0 = arith.constant 0 : i32
    %c0_i32_1 = arith.constant 0 : i32
    %c0_i32_2 = arith.constant 0 : i32
    return %arg0, %c0_i32, %c0_i32_0, %c0_i32_1 : i32, i32, i32, i32
  }
}

</mosaic_0001>

<bundles_post_ra>
// kernel: tpu_custom_call.1
= control target key start
LH: loop header
LB: loop body
LE: loop exit
PB: predicated region body
PF: predicated region fallthrough
CT: control target
= control target key end

     0   :  { %s3707_s15 = smov 0   ;;  %s5562_s0 = inlined_call_operand.vmem [shape: f32[2,16,16,3], index: 0, kind: input, shape index: {}]   ;;  %s5563_s1 = inlined_call_operand.vmem [shape: bf16[27,32], index: 1, kind: input, shape index: {}]   ;;  %s5564_s2 = inlined_call_operand.vmem [shape: f32[1,32], index: 2, kind: input, shape index: {}]   ;;  %s5565_s3 = inlined_call_operand.vmem [shape: f32[1,32], index: 3, kind: input, shape index: {}]   ;;  %s5566_s4 = inlined_call_operand.vmem [shape: f32[2,14,14,32], index: 4, kind: output, shape index: {}]  }
   0x1 LB: > { %s3511_s16 = sadd.s32 4294967295, %s3668_s15   ;;  %p3515_p0 = scmp.ge.s32.totalorder %s3668_s15, 1  ;;  %s3668_s15 = sphi %s3707_s15, %s14_s15  }
   0x2   : > { %p162_p1 = scmp.lt.s32.totalorder %s3668_s15, 3 }
   0x4   : > { %p163_p2 = pnand %p3515_p0, %p162_p1 }
   0x6   : > { %166 = sbr.rel (%p163_p2) target bundleno = 812 (0x32c), region = 36 }
   0xb   : > { %p188_p3 = scmp.lt.s32.totalorder %s3511_s16, 1  ;;  %vm259_vm0 = vcmask 1046528   ;;  %s3670_s21 = smov 3   ;;  %vm386_vm1 = vcmask 1045504   ;;  %vm2264_vm2 = vcmask 1044480   ;;  %vm3680_vm3 = vmmov 0  }
   0xc   : > { %s3671_s22 = smov 6   ;;  %s3672_s23 = smov 9   ;;  %vm1062_vm4 = vcmask 48128   ;;  %vm1033_vm5 = vcmask 23552   ;;  %vm1091_vm6 = vcmask 72704   ;;  %vm1120_vm7 = vcmask 97280  }
   0xd   : > { %s5740_s16 = smov (!%p188_p3, %s3511_s16), 1  ;;  %s3673_s24 = smov 12   ;;  %vm1149_vm8 = vcmask 121856   ;;  %vm1178_vm9 = vcmask 146432   ;;  %vm1207_vm10 = vcmask 171008   ;;  %vm1236_vm11 = vcmask 195584  }
   0xe   : > { %s3538_s17 = sshll.u32 %s5740_s16, 8  ;;  %s3674_s25 = smov 15   ;;  %vm2224_vm12 = vcmask 220160   ;;  %vm3426_vm13 = vcmask 261120   ;;  %vm3428_vm14 = vcmask 259072  }
   0xf   : > { %s3721_s20 = scalar_lea.vmem %s5562_s0, %s3538_s17  ;;  %s3675_s26 = smov 18  }
  0x10   : > { %v3724_v0 = vld [vmem:[%s3721_s20 + $0x18] sm:$0xff]  ;;  %v3727_v1 = vld [vmem:[%s3721_s20 + $0x8] sm:$0xff]  ;;  %v3737_v5 = vld [vmem:[%s3721_s20] sm:$0xff]  ;;  %s3676_s27 = smov 21   ;;  %s3678_s30 = smov 24  }
  0x11   : > { %v3730_v2 = vld [vmem:[%s3721_s20 + $0x28] sm:$0xff]  ;;  %v3733_v3 = vrot.slane %v3724_v0, 1  ;;  %v261_v4 = vrot.slane %v3727_v1, 1  ;;  %v3740_v6 = vld [vmem:[%s3721_s20 + $0x10] sm:$0xff]  ;;  %v3743_v7 = vld [vmem:[%s3721_s20 + $0x20] sm:$0xff]  ;;  %v260_v8 = vrot.slane %v3737_v5, 1 }
  0x12   : > { %v3750_v9 = vrot.slane %v3730_v2, 1  ;;  %v263_v11 = vrot.slane %v3740_v6, 1  ;;  %v266_v12 = vrot.slane %v3743_v7, 1  ;;  %v3756_v13 = vld [vmem:[%s3721_s20 + $0x38] sm:$0xff]  ;;  %v3759_v14 = vld [vmem:[%s3721_s20 + $0x30] sm:$0xff]  ;;  %v3777_v19 = vld [vmem:[%s3721_s20 + $0x48] sm:$0xff] }
  0x13   : > { %308 = vrot.lane.b32.xlu1 %v3733_v3, %s3670_s21  ;;  %304 = vrot.lane.b32.xlu0 %v261_v4, %s3670_s21  ;;  %v262_v10 = vsel %vm259_vm0, %v260_v8, %v261_v4  ;;  %v3773_v17 = vrot.slane %v3756_v13, 1  ;;  %v269_v18 = vrot.slane %v3759_v14, 1  ;;  %v3780_v20 = vld [vmem:[%s3721_s20 + $0x40] sm:$0xff]  ;;  %v3791_v22 = vrot.slane %v3777_v19, 1  ;;  %v3795_v24 = vld [vmem:[%s3721_s20 + $0x58] sm:$0xff]  ;;  %s3614_s11 = smul.u32 224, %s5740_s16 }
  0x14   : > { %v3766_v15 = vsel %vm259_vm0, %v263_v11, %v3733_v3  ;;  %v3770_v16 = vsel %vm259_vm0, %v266_v12, %v3750_v9  ;;  %v272_v23 = vrot.slane %v3780_v20, 1  ;;  %v3798_v25 = vld [vmem:[%s3721_s20 + $0x50] sm:$0xff]  ;;  %v3809_v27 = vrot.slane %v3795_v24, 1  ;;  %v3813_v29 = vld [vmem:[%s3721_s20 + $0x68] sm:$0xff]  ;;  %v3816_v30 = vld [vmem:[%s3721_s20 + $0x60] sm:$0xff] }
  0x15   : > { %v3788_v21 = vsel %vm259_vm0, %v269_v18, %v3773_v17  ;;  %v275_v28 = vrot.slane %v3798_v25, 1  ;;  %5616 = vst [vmem:[#allocation2_spill] sm:$0xff] %v3813_v29  ;;  %v3827_v32 = vrot.slane %v3813_v29, 1  ;;  %v278_v33 = vrot.slane %v3816_v30, 1  ;;  %v3831_v34 = vld [vmem:[%s3721_s20 + $0x78] sm:$0xff]  ;;  %v3834_v35 = vld [vmem:[%s3721_s20 + $0x70] sm:$0xff]  ;;  %s5113_s14 = scalar_lea.vmem %s5566_s4, %s3614_s11 }
  0x16   : > { %v3806_v26 = vsel %vm259_vm0, %v272_v23, %v3791_v22  ;;  %5618 = vst [vmem:[#allocation4_spill] sm:$0xff] %v3831_v34  ;;  %5619 = vst [vmem:[#allocation5_spill] sm:$0xff] %v3834_v35  ;;  %v3845_v37 = vrot.slane %v3831_v34, 1  ;;  %v281_v38 = vrot.slane %v3834_v35, 1  ;;  %v3849_v39 = vld [vmem:[%s3721_s20 + $0x88] sm:$0xff]  ;;  %v3852_v40 = vld [vmem:[%s3721_s20 + $0x80] sm:$0xff] }
  0x17   : > { %312 = vrot.lane.b32.xlu1 %v3750_v9, %s3670_s21  ;;  %302 = vrot.lane.b32.xlu0 %v262_v10, %s3670_s21  ;;  %v3824_v31 = vsel %vm259_vm0, %v275_v28, %v3809_v27  ;;  %5617 = vst [vmem:[#allocation3_spill] sm:$0xff] %v3827_v32  ;;  %v3842_v36 = vsel %vm259_vm0, %v278_v33, %v3827_v32  ;;  %5621 = vst [vmem:[#allocation7_spill] sm:$0xff] %v3849_v39  ;;  %v3863_v42 = vrot.slane %v3849_v39, 1  ;;  %v3867_v44 = vld [vmem:[%s3721_s20 + $0x98] sm:$0xff]  ;;  %v3870_v45 = vld [vmem:[%s3721_s20 + $0x90] sm:$0xff] }
  0x18   : > { %5620 = vst [vmem:[#allocation6_spill] sm:$0xff] %v3845_v37  ;;  %5622 = vst [vmem:[#allocation8_spill] sm:$0xff] %v3852_v40  ;;  %v3860_v41 = vsel %vm259_vm0, %v281_v38, %v3845_v37  ;;  %v284_v43 = vrot.slane %v3852_v40, 1  ;;  %v3881_v47 = vrot.slane %v3867_v44, 1  ;;  %v287_v48 = vrot.slane %v3870_v45, 1  ;;  %v3885_v49 = vld [vmem:[%s3721_s20 + $0xa8] sm:$0xff] }
  0x19   : > { %5623 = vst [vmem:[#allocation9_spill] sm:$0xff] %v3860_v41  ;;  %5624 = vst [vmem:[#allocation10_spill] sm:$0xff] %v3863_v42  ;;  %v3888_v50 = vld [vmem:[%s3721_s20 + $0xa0] sm:$0xff]  ;;  %v3899_v52 = vrot.slane %v3885_v49, 1  ;;  %v3903_v54 = vld [vmem:[%s3721_s20 + $0xb8] sm:$0xff]  ;;  %v388_v23 = vrot.slane %v3727_v1, 2 }
  0x1a   : > { %v3878_v46 = vsel %vm259_vm0, %v284_v43, %v3863_v42  ;;  %5626 = vst [vmem:[#allocation12_spill] sm:$0xff] %v3881_v47  ;;  %v3896_v51 = vsel %vm259_vm0, %v287_v48, %v3881_v47  ;;  %v290_v53 = vrot.slane %v3888_v50, 1  ;;  %v3906_v55 = vld [vmem:[%s3721_s20 + $0xb0] sm:$0xff]  ;;  %v3917_v57 = vrot.slane %v3903_v54, 1  ;;  %v3921_v59 = vld [vmem:[%s3721_s20 + $0xc8] sm:$0xff]  ;;  %v3924_v60 = vld [vmem:[%s3721_s20 + $0xc0] sm:$0xff] }
  0x1b   : > { %306 = vrot.lane.b32.xlu1 %v3766_v15, %s3670_s21  ;;  %310 = vrot.lane.b32.xlu0 %v3770_v16, %s3670_s21  ;;  %5625 = vst [vmem:[#allocation11_spill] sm:$0xff] %v3878_v46  ;;  %5627 = vst [vmem:[#allocation13_spill] sm:$0xff] %v3896_v51  ;;  %v293_v58 = vrot.slane %v3906_v55, 1  ;;  %v3935_v62 = vrot.slane %v3921_v59, 1  ;;  %v296_v63 = vrot.slane %v3924_v60, 1  ;;  %v3939_v4 = vld [vmem:[%s3721_s20 + $0xd8] sm:$0xff] }
  0x1c   : > { %v3914_v56 = vsel %vm259_vm0, %v290_v53, %v3899_v52  ;;  %5628 = vst [vmem:[#allocation14_spill] sm:$0xff] %v3921_v59  ;;  %v3942_v8 = vld [vmem:[%s3721_s20 + $0xd0] sm:$0xff]  ;;  %v3953_v11 = vrot.slane %v3939_v4, 1  ;;  %v387_v28 = vrot.slane %v3737_v5, 2  ;;  %v3972_v38 = vrot.slane %v3724_v0, 2 }
  0x1d   : > { %v3932_v61 = vsel %vm259_vm0, %v293_v58, %v3917_v57  ;;  %5629 = vst [vmem:[#allocation15_spill] sm:$0xff] %v3935_v62  ;;  %5630 = vst [vmem:[#allocation16_spill] sm:$0xff] %v3942_v8  ;;  %v3950_v10 = vsel %vm259_vm0, %v296_v63, %v3935_v62  ;;  %v299_v12 = vrot.slane %v3942_v8, 1  ;;  %v390_v43 = vrot.slane %v3740_v6, 2 }
  0x1e   : > { %5631 = vst [vmem:[#allocation17_spill] sm:$0xff] %v3953_v11  ;;  %v389_v33 = vsel %vm386_vm1, %v387_v28, %v388_v23  ;;  %v3982_v53 = vrot.slane %v3730_v2, 2  ;;  %v393_v58 = vrot.slane %v3743_v7, 2 }
  0x1f   : > { %316 = vrot.lane.b32.xlu1 %v3773_v17, %s3670_s21  ;;  %314 = vrot.lane.b32.xlu0 %v3788_v21, %s3670_s21  ;;  %v3962_v18 = vsel %vm259_vm0, %v299_v12, %v3953_v11  ;;  %v3979_v48 = vsel %vm386_vm1, %v390_v43, %v3972_v38  ;;  %v3994_v12 = vrot.slane %v3756_v13, 2  ;;  %v399_v43 = vrot.slane %v3780_v20, 2 }
  0x20   : > { %5632 = vst [vmem:[#allocation18_spill] sm:$0xff] %v3962_v18  ;;  %v3991_v63 = vsel %vm386_vm1, %v393_v58, %v3982_v53 }
  0x23   : > { %320 = vrot.lane.b32.xlu1 %v3791_v22, %s3670_s21  ;;  %318 = vrot.lane.b32.xlu0 %v3806_v26, %s3670_s21 }
  0x27   : > { %324 = vrot.lane.b32.xlu1 %v3809_v27, %s3670_s21  ;;  %322 = vrot.lane.b32.xlu0 %v3824_v31, %s3670_s21 }
  0x2b   : > { %328 = vrot.lane.b32.xlu1 %v3827_v32, %s3670_s21  ;;  %326 = vrot.lane.b32.xlu0 %v3842_v36, %s3670_s21  ;;  %v4042_v32 = vrot.slane %v3831_v34, 2 }
  0x2d   : > { %5634 = vst [vmem:[#allocation20_spill] sm:$0xff] %v4042_v32 }
  0x2f   : > { %332 = vrot.lane.b32.xlu1 %v3845_v37, %s3670_s21  ;;  %330 = vrot.lane.b32.xlu0 %v3860_v41, %s3670_s21 }
  0x33   : > { %336 = vrot.lane.b32.xlu1 %v3863_v42, %s3670_s21  ;;  %334 = vrot.lane.b32.xlu0 %v3878_v46, %s3670_s21  ;;  %v4018_v42 = vrot.slane %v3795_v24, 2 }
  0x37   : > { %340 = vrot.lane.b32.xlu1 %v3881_v47, %s3670_s21  ;;  %338 = vrot.lane.b32.xlu0 %v3896_v51, %s3670_s21 }
  0x3b   : > { %344 = vrot.lane.b32.xlu1 %v3899_v52, %s3670_s21  ;;  %342 = vrot.lane.b32.xlu0 %v3914_v56, %s3670_s21 }
  0x3f   : > { %348 = vrot.lane.b32.xlu1 %v3917_v57, %s3670_s21  ;;  %346 = vrot.lane.b32.xlu0 %v3932_v61, %s3670_s21 }
  0x43   : > { %352 = vrot.lane.b32.xlu1 %v3935_v62, %s3670_s21  ;;  %350 = vrot.lane.b32.xlu0 %v3950_v10, %s3670_s21 }
  0x47   : > { %356 = vrot.lane.b32.xlu1 %v3953_v11, %s3670_s21  ;;  %354 = vrot.lane.b32.xlu0 %v3962_v18, %s3670_s21  ;;  %v4030_v11 = vrot.slane %v3813_v29, 2  ;;  %v4054_v18 = vrot.slane %v3849_v39, 2  ;;  %v4078_v39 = vrot.slane %v3885_v49, 2  ;;  %v426_v29 = vrot.slane %v3942_v8, 2  ;;  %v3635_v8 = vld [vmem:[%s5563_s1 + $0x8] sm:$0x3f]  }
  0x49   : > { %5633 = vst [vmem:[#allocation19_spill] sm:$0xff] %v4030_v11  ;;  %5636 = vst [vmem:[#allocation22_spill] sm:$0xff] %v4054_v18 }
  0x4b   : > { %431 = vrot.lane.b32.xlu1 %v388_v23, %s3671_s22  ;;  %429 = vrot.lane.b32.xlu0 %v389_v33, %s3671_s22  ;;  %v396_v23 = vrot.slane %v3759_v14, 2  ;;  %v4006_v33 = vrot.slane %v3777_v19, 2 }
  0x4d   : > { %v4003_v28 = vsel %vm386_vm1, %v396_v23, %v3994_v12  ;;  %v4015_v58 = vsel %vm386_vm1, %v399_v43, %v4006_v33  ;;  %v402_v23 = vrot.slane %v3798_v25, 2  ;;  %v405_v43 = vrot.slane %v3816_v30, 2 }
  0x4f   : > { %435 = vrot.lane.b32.xlu1 %v3972_v38, %s3671_s22  ;;  %433 = vrot.lane.b32.xlu0 %v3979_v48, %s3671_s22  ;;  %v4027_v46 = vsel %vm386_vm1, %v402_v23, %v4018_v42  ;;  %v4039_v37 = vsel %vm386_vm1, %v405_v43, %v4030_v11  ;;  %v408_v23 = vrot.slane %v3834_v35, 2  ;;  %v411_v43 = vrot.slane %v3852_v40, 2 }
  0x50   : > { %v4102_v40 = vrot.slane %v3921_v59, 2 }
  0x51   : > { %v4051_v62 = vsel %vm386_vm1, %v408_v23, %v4042_v32  ;;  %v4063_v34 = vsel %vm386_vm1, %v411_v43, %v4054_v18  ;;  %v414_v23 = vrot.slane %v3870_v45, 2  ;;  %v417_v43 = vrot.slane %v3888_v50, 2 }
  0x52   : > { %5635 = vst [vmem:[#allocation21_spill] sm:$0xff] %v4051_v62  ;;  %5637 = vst [vmem:[#allocation23_spill] sm:$0xff] %v4063_v34 }
  0x53   : > { %439 = vrot.lane.b32.xlu1 %v3982_v53, %s3671_s22  ;;  %437 = vrot.lane.b32.xlu0 %v3991_v63, %s3671_s22  ;;  %5640 = vst [vmem:[#allocation26_spill] sm:$0xff] %v4102_v40 }
  0x57   : > { %443 = vrot.lane.b32.xlu1 %v3994_v12, %s3671_s22  ;;  %441 = vrot.lane.b32.xlu0 %v4003_v28, %s3671_s22 }
  0x5b   : > { %447 = vrot.lane.b32.xlu1 %v4006_v33, %s3671_s22  ;;  %445 = vrot.lane.b32.xlu0 %v4015_v58, %s3671_s22 }
  0x5f   : > { %451 = vrot.lane.b32.xlu1 %v4018_v42, %s3671_s22  ;;  %449 = vrot.lane.b32.xlu0 %v4027_v46, %s3671_s22 }
  0x63   : > { %455 = vrot.lane.b32.xlu1 %v4030_v11, %s3671_s22  ;;  %453 = vrot.lane.b32.xlu0 %v4039_v37, %s3671_s22  ;;  %v4066_v11 = vrot.slane %v3867_v44, 2 }
  0x65   : > { %5638 = vst [vmem:[#allocation24_spill] sm:$0xff] %v4066_v11 }
  0x67   : > { %459 = vrot.lane.b32.xlu1 %v4042_v32, %s3671_s22  ;;  %457 = vrot.lane.b32.xlu0 %v4051_v62, %s3671_s22  ;;  %v4075_v32 = vsel %vm386_vm1, %v414_v23, %v4066_v11  ;;  %v420_v23 = vrot.slane %v3906_v55, 2 }
  0x68   : > { %5639 = vst [vmem:[#allocation25_spill] sm:$0xff] %v4075_v32 }
  0x6b   : > { %463 = vrot.lane.b32.xlu1 %v4054_v18, %s3671_s22  ;;  %461 = vrot.lane.b32.xlu0 %v4063_v34, %s3671_s22  ;;  %v4087_v18 = vsel %vm386_vm1, %v417_v43, %v4078_v39  ;;  %v4090_v34 = vrot.slane %v3903_v54, 2  ;;  %v423_v43 = vrot.slane %v3924_v60, 2 }
  0x6d   : > { %v4099_v62 = vsel %vm386_vm1, %v420_v23, %v4090_v34  ;;  %v4111_v41 = vsel %vm386_vm1, %v423_v43, %v4102_v40  ;;  %v4115_v23 = vrot.slane %v3939_v4, 2 }
  0x6f   : > { %467 = vrot.lane.b32.xlu1 %v4066_v11, %s3671_s22  ;;  %465 = vrot.lane.b32.xlu0 %v4075_v32, %s3671_s22  ;;  %5641 = vst [vmem:[#allocation27_spill] sm:$0xff] %v4115_v23  ;;  %v4123_v35 = vsel %vm386_vm1, %v426_v29, %v4115_v23 }
  0x70   : > { %5642 = vst [vmem:[#allocation28_spill] sm:$0xff] %v4123_v35 }
  0x73   : > { %471 = vrot.lane.b32.xlu1 %v4078_v39, %s3671_s22  ;;  %469 = vrot.lane.b32.xlu0 %v4087_v18, %s3671_s22 }
  0x77   : > { %475 = vrot.lane.b32.xlu1 %v4090_v34, %s3671_s22  ;;  %473 = vrot.lane.b32.xlu0 %v4099_v62, %s3671_s22 }
  0x7b   : > { %479 = vrot.lane.b32.xlu1 %v4102_v40, %s3671_s22  ;;  %477 = vrot.lane.b32.xlu0 %v4111_v41, %s3671_s22 }
  0x7f   : > { %515 = vrot.lane.b32.xlu1 %v3740_v6, %s3672_s23  ;;  %481 = vrot.lane.b32.xlu0 %v4123_v35, %s3671_s22 }
  0x83   : > { %517 = vrot.lane.b32.xlu1 %v3724_v0, %s3672_s23  ;;  %602 = vrot.lane.b32.xlu0 %v3766_v15, %s3673_s24 }
  0x85   : > { %v4133_v4 = vpop.permute.xlu1 %308  ;;  %v4135_v43 = vpop.permute.xlu0 %304 }
  0x87   : > { %604 = vrot.lane.b32.xlu1 %v3733_v3, %s3673_s24  ;;  %689 = vrot.lane.b32.xlu0 %v3979_v48, %s3674_s25 }
  0x89   : > { %v4141_v29 = vpop.permute.xlu1 %312  ;;  %v4143_v23 = vpop.permute.xlu0 %302 }
  0x8a   : > { %5643 = vst [vmem:[#allocation29_spill] sm:$0xff] %v4141_v29 }
  0x8b   : > { %519 = vrot.lane.b32.xlu1 %v3743_v7, %s3672_s23  ;;  %775 = vrot.lane.b32.xlu0 %v3743_v7, %s3675_s26 }
  0x8d   : > { %v4149_v15 = vpop.permute.xlu1 %306  ;;  %v4151_v35 = vpop.permute.xlu0 %310 }
  0x8f   : > { %862 = vrot.lane.b32.xlu1 %v3770_v16, %s3676_s27  ;;  %691 = vrot.lane.b32.xlu0 %v3972_v38, %s3674_s25  ;;  %v3677_v38 = vmov 65535  }
  0x90   : > { %v2265_v59 = vsel %vm2264_vm2, 4294967295, %v3677_v38 }
  0x91   : > { %v4157_v3 = vpop.permute.xlu1 %316  ;;  %v4159_v48 = vpop.permute.xlu0 %314 }
  0x92   : > { %5644 = vst [vmem:[#allocation30_spill] sm:$0xff] %v4157_v3  ;;  %5645 = vst [vmem:[#allocation31_spill] sm:$0xff] %v4159_v48  ;;  %v5610_v48 = vmov 0.0  }
  0x93   : > { %777 = vrot.lane.b32.xlu1 %v3730_v2, %s3675_s26  ;;  %606 = vrot.lane.b32.xlu0 %v3770_v16, %s3673_s24  ;;  %v2266_v16 = vsel %vm386_vm1, %v2265_v59, 0  ;;  %v3636_v59 = vld [vmem:[%s5563_s1] sm:$0xff]  }
  0x94   : > { %v2268_v3 = vand.u32 %v3635_v8, %v2266_v16  ;;  %3554 = vmatprep.subr.bf16.mxu0 %v5610_v48  ;;  %3610 = vmatprep.subr.bf16.mxu1 %v5610_v48 }
  0x95   : > { %v4165_v29 = vpop.permute.xlu1 %320  ;;  %v4167_v40 = vpop.permute.xlu0 %318  ;;  %3558 = vmatprep.mubr.msk.bf16.mxu0 %vm3680_vm3, %v5610_v48  ;;  %3586 = vmatprep.mubr.msk.bf16.mxu1 %vm3680_vm3, %v5610_v48 }
  0x96   : > { %5646 = vst [vmem:[#allocation32_spill] sm:$0xff] %v4165_v29  ;;  %5647 = vst [vmem:[#allocation33_spill] sm:$0xff] %v4167_v40  ;;  %3555 = vmatpush3.bf16.msra.mxu0 %v2268_v3  ;;  %3612 = vmatpush3.bf16.msra.mxu1 %v2268_v3 }
  0x97   : > { %693 = vrot.lane.b32.xlu1 %v3991_v63, %s3674_s25  ;;  %949 = vrot.lane.b32.xlu0 %v3991_v63, %s3678_s30 }
  0x98   : > { %3556 = vmatprep.subr.bf16.mxu0 %v5610_v48  ;;  %3611 = vmatprep.subr.bf16.mxu1 %v5610_v48 }
  0x99   : > { %v4177_v29 = vpop.permute.xlu1 %324  ;;  %v4179_v40 = vpop.permute.xlu0 %322 }
  0x9a   : > { %5648 = vst [vmem:[#allocation34_spill] sm:$0xff] %v4177_v29  ;;  %5649 = vst [vmem:[#allocation35_spill] sm:$0xff] %v4179_v40  ;;  %3557 = vmatpush3.bf16.msra.mxu0 %v3636_v59  ;;  %3613 = vmatpush3.bf16.msra.mxu1 %v3636_v59 }
  0x9b   : > { %779 = vrot.lane.b32.xlu1 %v3759_v14, %s3675_s26  ;;  %864 = vrot.lane.b32.xlu0 %v3750_v9, %s3676_s27 }
  0x9d   : > { %v4192_v8 = vpop.permute.xlu1 %328  ;;  %v4194_v63 = vpop.permute.xlu0 %326 }
  0x9e   : > { %5650 = vst [vmem:[#allocation36_spill] sm:$0xff] %v4192_v8  ;;  %5651 = vst [vmem:[#allocation37_spill] sm:$0xff] %v4194_v63 }
  0x9f   : > { %866 = vrot.lane.b32.xlu1 %v3788_v21, %s3676_s27  ;;  %951 = vrot.lane.b32.xlu0 %v3982_v53, %s3678_s30 }
  0xa1   : > { %v4204_v3 = vpop.permute.xlu1 %332  ;;  %v4206_v38 = vpop.permute.xlu0 %330 }
  0xa2   : > { %5652 = vst [vmem:[#allocation38_spill] sm:$0xff] %v4204_v3  ;;  %5653 = vst [vmem:[#allocation39_spill] sm:$0xff] %v4206_v38 }
  0xa3   : > { %521 = vrot.lane.b32.xlu1 %v3730_v2, %s3672_s23  ;;  %953 = vrot.lane.b32.xlu0 %v4003_v28, %s3678_s30 }
  0xa5   : > { %v4212_v16 = vpop.permute.xlu1 %336  ;;  %v4214_v59 = vpop.permute.xlu0 %334 }
  0xa7   : > { %608 = vrot.lane.b32.xlu1 %v3750_v9, %s3673_s24  ;;  %523 = vrot.lane.b32.xlu0 %v3759_v14, %s3672_s23 }
  0xa9   : > { %v4220_v48 = vpop.permute.xlu1 %340  ;;  %v4222_v3 = vpop.permute.xlu0 %338 }
  0xab   : > { %695 = vrot.lane.b32.xlu1 %v3982_v53, %s3674_s25  ;;  %610 = vrot.lane.b32.xlu0 %v3788_v21, %s3673_s24 }
  0xad   : > { %v4228_v2 = vpop.permute.xlu1 %344  ;;  %v4230_v38 = vpop.permute.xlu0 %342 }
  0xae   : > { %5654 = vst [vmem:[#allocation40_spill] sm:$0xff] %v4228_v2  ;;  %5655 = vst [vmem:[#allocation41_spill] sm:$0xff] %v4230_v38 }
  0xaf   : > { %781 = vrot.lane.b32.xlu1 %v3756_v13, %s3675_s26  ;;  %697 = vrot.lane.b32.xlu0 %v4003_v28, %s3674_s25 }
  0xb1   : > { %v4236_v9 = vpop.permute.xlu1 %348  ;;  %v4238_v14 = vpop.permute.xlu0 %346 }
  0xb2   : > { %5656 = vst [vmem:[#allocation42_spill] sm:$0xff] %v4236_v9  ;;  %5657 = vst [vmem:[#allocation43_spill] sm:$0xff] %v4238_v14 }
  0xb3   : > { %547 = vrot.lane.b32.xlu1 %v3870_v45, %s3672_s23  ;;  %783 = vrot.lane.b32.xlu0 %v3780_v20, %s3675_s26 }
  0xb5   : > { %v4244_v21 = vpop.permute.xlu1 %352  ;;  %v4246_v53 = vpop.permute.xlu0 %350 }
  0xb6   : > { %5658 = vst [vmem:[#allocation44_spill] sm:$0xff] %v4244_v21  ;;  %5659 = vst [vmem:[#allocation45_spill] sm:$0xff] %v4246_v53 }
  0xb7   : > { %870 = vrot.lane.b32.xlu1 %v3806_v26, %s3676_s27  ;;  %868 = vrot.lane.b32.xlu0 %v3773_v17, %s3676_s27 }
  0xb9   : > { %v4252_v28 = vpop.permute.xlu1 %356  ;;  %v4254_v8 = vpop.permute.xlu0 %354 }
  0xba   : > { %5660 = vst [vmem:[#allocation46_spill] sm:$0xff] %v4252_v28  ;;  %5661 = vst [vmem:[#allocation47_spill] sm:$0xff] %v4254_v8 }
  0xbb   : > { %955 = vrot.lane.b32.xlu1 %v3994_v12, %s3678_s30  ;;  %634 = vrot.lane.b32.xlu0 %v3896_v51, %s3673_s24 }
  0xbd   : > { %v4260_v9 = vpop.permute.xlu1 %431  ;;  %v4262_v21 = vpop.permute.xlu0 %429 }
  0xbf   : > { %549 = vrot.lane.b32.xlu1 %v3867_v44, %s3672_s23  ;;  %957 = vrot.lane.b32.xlu0 %v4015_v58, %s3678_s30 }
  0xc1   : > { %v4268_v63 = vpop.permute.xlu1 %435  ;;  %v4270_v28 = vpop.permute.xlu0 %433 }
  0xc3   : > { %636 = vrot.lane.b32.xlu1 %v3881_v47, %s3673_s24  ;;  %721 = vrot.lane.b32.xlu0 %v4075_v32, %s3674_s25 }
  0xc5   : > { %v4276_v8 = vpop.permute.xlu1 %439  ;;  %v4278_v53 = vpop.permute.xlu0 %437 }
  0xc7   : > { %525 = vrot.lane.b32.xlu1 %v3756_v13, %s3672_s23  ;;  %807 = vrot.lane.b32.xlu0 %v3888_v50, %s3675_s26 }
  0xc9   : > { %v4284_v44 = vpop.permute.xlu1 %443  ;;  %v4286_v29 = vpop.permute.xlu0 %441 }
  0xca   : > { %5662 = vst [vmem:[#allocation48_spill] sm:$0xff] %v4284_v44  ;;  %v1297_v44 = vlaneseq }
  0xcb   : > { %551 = vrot.lane.b32.xlu1 %v3888_v50, %s3672_s23  ;;  %527 = vrot.lane.b32.xlu0 %v3780_v20, %s3672_s23 }
  0xcd   : > { %v4292_v47 = vpop.permute.xlu1 %447  ;;  %v4294_v32 = vpop.permute.xlu0 %445 }
  0xce   : > { %5663 = vst [vmem:[#allocation49_spill] sm:$0xff] %v4292_v47 }
  0xcf   : > { %894 = vrot.lane.b32.xlu1 %v3914_v56, %s3676_s27  ;;  %723 = vrot.lane.b32.xlu0 %v4066_v11, %s3674_s25 }
  0xd1   : > { %v4300_v13 = vpop.permute.xlu1 %451  ;;  %v4302_v14 = vpop.permute.xlu0 %449 }
  0xd2   : > { %5664 = vst [vmem:[#allocation50_spill] sm:$0xff] %v4300_v13  ;;  %5665 = vst [vmem:[#allocation51_spill] sm:$0xff] %v4302_v14  ;;  %v3681_v14 = vmov 1983009808  }
  0xd3   : > { %614 = vrot.lane.b32.xlu1 %v3806_v26, %s3673_s24  ;;  %612 = vrot.lane.b32.xlu0 %v3773_v17, %s3673_s24  ;;  %v1295_v40 = vunpack.c.l.s4 %v3681_v14 }
  0xd5   : > { %v4308_v20 = vpop.permute.xlu1 %455  ;;  %v4310_v50 = vpop.permute.xlu0 %453 }
  0xd6   : > { %5666 = vst [vmem:[#allocation52_spill] sm:$0xff] %v4308_v20  ;;  %5667 = vst [vmem:[#allocation53_spill] sm:$0xff] %v4310_v50 }
  0xd7   : > { %809 = vrot.lane.b32.xlu1 %v3885_v49, %s3675_s26  ;;  %638 = vrot.lane.b32.xlu0 %v3914_v56, %s3673_s24 }
  0xd9   : > { %v4316_v47 = vpop.permute.xlu1 %459  ;;  %v4318_v13 = vpop.permute.xlu0 %457 }
  0xda   : > { %5668 = vst [vmem:[#allocation54_spill] sm:$0xff] %v4316_v47  ;;  %5669 = vst [vmem:[#allocation55_spill] sm:$0xff] %v4318_v13 }
  0xdb   : > { %699 = vrot.lane.b32.xlu1 %v3994_v12, %s3674_s25  ;;  %981 = vrot.lane.b32.xlu0 %v4087_v18, %s3678_s30 }
  0xdd   : > { %v4324_v17 = vpop.permute.xlu1 %463  ;;  %v4326_v26 = vpop.permute.xlu0 %461 }
  0xdf   : > { %725 = vrot.lane.b32.xlu1 %v4087_v18, %s3674_s25  ;;  %701 = vrot.lane.b32.xlu0 %v4015_v58, %s3674_s25 }
  0xe1   : > { %v4332_v56 = vpop.permute.xlu1 %467  ;;  %v4334_v47 = vpop.permute.xlu0 %465 }
  0xe3   : > { %785 = vrot.lane.b32.xlu1 %v3777_v19, %s3675_s26  ;;  %896 = vrot.lane.b32.xlu0 %v3899_v52, %s3676_s27 }
  0xe5   : > { %v4340_v12 = vpop.permute.xlu1 %471  ;;  %v4342_v13 = vpop.permute.xlu0 %469 }
  0xe6   : > { %5670 = vst [vmem:[#allocation56_spill] sm:$0xff] %v4340_v12  ;;  %5671 = vst [vmem:[#allocation57_spill] sm:$0xff] %v4342_v13 }
  0xe7   : > { %811 = vrot.lane.b32.xlu1 %v3906_v55, %s3675_s26  ;;  %787 = vrot.lane.b32.xlu0 %v3798_v25, %s3675_s26 }
  0xe9   : > { %v4348_v18 = vpop.permute.xlu1 %475  ;;  %v4350_v58 = vpop.permute.xlu0 %473 }
  0xea   : > { %5672 = vst [vmem:[#allocation58_spill] sm:$0xff] %v4348_v18  ;;  %5673 = vst [vmem:[#allocation59_spill] sm:$0xff] %v4350_v58 }
  0xeb   : > { %872 = vrot.lane.b32.xlu1 %v3791_v22, %s3676_s27  ;;  %983 = vrot.lane.b32.xlu0 %v4078_v39, %s3678_s30 }
  0xed   : > { %v4356_v20 = vpop.permute.xlu1 %479  ;;  %v4358_v50 = vpop.permute.xlu0 %477 }
  0xee   : > { %5674 = vst [vmem:[#allocation60_spill] sm:$0xff] %v4356_v20  ;;  %5675 = vst [vmem:[#allocation61_spill] sm:$0xff] %v4358_v50 }
  0xef   : > { %898 = vrot.lane.b32.xlu1 %v3932_v61, %s3676_s27  ;;  %874 = vrot.lane.b32.xlu0 %v3824_v31, %s3676_s27 }
  0xf1   : > { %v516_v11 = vpop.permute.xlu1 %515  ;;  %v4364_v18 = vpop.permute.xlu0 %481 }
  0xf2   : > { %5676 = vst [vmem:[#allocation62_spill] sm:$0xff] %v4364_v18 }
  0xf3   : > { %961 = vrot.lane.b32.xlu1 %v4027_v46, %s3678_s30  ;;  %959 = vrot.lane.b32.xlu0 %v4006_v33, %s3678_s30 }
  0xf5   : > { %v518_v58 = vpop.permute.xlu1 %517  ;;  %v603_v51 = vpop.permute.xlu0 %602 }
  0xf7   : > { %531 = vrot.lane.b32.xlu1 %v3798_v25, %s3672_s23  ;;  %985 = vrot.lane.b32.xlu0 %v4099_v62, %s3678_s30 }
  0xf9   : > { %v605_v20 = vpop.permute.xlu1 %604  ;;  %v690_v50 = vpop.permute.xlu0 %689 }
  0xfb   : > { %555 = vrot.lane.b32.xlu1 %v3906_v55, %s3672_s23  ;;  %553 = vrot.lane.b32.xlu0 %v3885_v49, %s3672_s23  ;;  %v1034_v49 = vsel %vm1033_vm5, %v3737_v5, %v4143_v23  ;;  %v1296_v5 = vunpack.c.0.s8 %v1295_v40  ;;  %v1298_v23 = vshrl.u32 %v1297_v44, 7 }
  0xfd   : > { %v520_v18 = vpop.permute.xlu1 %519  ;;  %v776_v12 = vpop.permute.xlu0 %775 }
  0xff   : > { %640 = vrot.lane.b32.xlu1 %v3899_v52, %s3673_s24  ;;  %618 = vrot.lane.b32.xlu0 %v3824_v31, %s3673_s24  ;;  %v1063_v31 = vsel %vm1062_vm4, %v1034_v49, %v4262_v21  ;;  %v4400_v49 = vsub.s32 %v1296_v5, %v1298_v23 }
 0x100   : > { %v1092_v52 = vsel %vm1091_vm6, %v1063_v31, %v516_v11 }
 0x101   : > { %v863_v25 = vpop.permute.xlu1 %862  ;;  %v692_v2 = vpop.permute.xlu0 %691  ;;  %v1121_v13 = vsel %vm1120_vm7, %v1092_v52, %v603_v51  ;;  %v1035_v51 = vsel %vm1033_vm5, %v3727_v1, %v4135_v43 }
 0x102   : > { %v1150_v38 = vsel %vm1149_vm8, %v1121_v13, %v690_v50 }
 0x103   : > { %529 = vrot.lane.b32.xlu1 %v3777_v19, %s3672_s23  ;;  %642 = vrot.lane.b32.xlu0 %v3932_v61, %s3673_s24  ;;  %v1179_v19 = vsel %vm1178_vm9, %v1150_v38, %v776_v12 }
 0x104   : > { %v1208_v61 = vsel %vm1207_vm10, %v1179_v19, %v863_v25 }
 0x105   : > { %v778_v55 = vpop.permute.xlu1 %777  ;;  %v607_v14 = vpop.permute.xlu0 %606 }
 0x107   : > { %727 = vrot.lane.b32.xlu1 %v4078_v39, %s3674_s25  ;;  %705 = vrot.lane.b32.xlu0 %v4027_v46, %s3674_s25  ;;  %v1064_v39 = vsel %vm1062_vm4, %v1035_v51, %v4260_v9 }
 0x108   : > { %v1093_v46 = vsel %vm1091_vm6, %v1064_v39, %v518_v58 }
 0x109   : > { %v694_v11 = vpop.permute.xlu1 %693  ;;  %v950_v21 = vpop.permute.xlu0 %949  ;;  %v1122_v12 = vsel %vm1120_vm7, %v1093_v46, %v605_v20 }
 0x10a   : > { %v1237_v40 = vsel %vm1236_vm11, %v1208_v61, %v950_v21  ;;  %v1151_v43 = vsel %vm1149_vm8, %v1122_v12, %v692_v2 }
 0x10b   : > { %v1293_v44 = vcombine.high %v1237_v40, %v1237_v40  ;;  %616 = vrot.lane.b32.xlu1 %v3791_v22, %s3673_s24  ;;  %729 = vrot.lane.b32.xlu0 %v4099_v62, %s3674_s25  ;;  %v1300_v1 = vrot.slane %v1237_v40, %v4400_v49  ;;  %v1036_v22 = vsel %vm1033_vm5, %v3740_v6, %v4149_v15 }
 0x10c   : > { %v1065_v62 = vsel %vm1062_vm4, %v1036_v22, %v4270_v28  ;;  %v1180_v9 = vsel %vm1178_vm9, %v1151_v43, %v778_v55 }
 0x10d   : > { %v1307_v38 = vrot.slane %v1293_v44, %v4400_v49  ;;  %v780_v13 = vpop.permute.xlu1 %779  ;;  %v865_v50 = vpop.permute.xlu0 %864  ;;  %v1094_v20 = vsel %vm1091_vm6, %v1065_v62, %v520_v18  ;;  %v1308_v2 = vcombine.high %v1300_v1, %v1300_v1 }
 0x10e   : > { %v1209_v25 = vsel %vm1207_vm10, %v1180_v9, %v865_v50  ;;  %v1123_v15 = vsel %vm1120_vm7, %v1094_v20, %v607_v14 }
 0x10f   : > { %813 = vrot.lane.b32.xlu1 %v3903_v54, %s3675_s26  ;;  %791 = vrot.lane.b32.xlu0 %v3816_v30, %s3675_s26  ;;  %v1309_v58 = vcombine.high %v1307_v38, %v1307_v38  ;;  %v1152_v5 = vsel %vm1149_vm8, %v1123_v15, %v694_v11  ;;  %v1755_v40 = vcombine.low %v1300_v1, %v1308_v2 }
 0x110   : > { %v1181_v28 = vsel %vm1178_vm9, %v1152_v5, %v780_v13  ;;  %v1037_v2 = vsel %vm1033_vm5, %v3724_v0, %v4133_v4  ;;  %v1038_v0 = vsel %vm1033_vm5, %v3743_v7, %v4151_v35 }
 0x111   : > { %v867_v31 = vpop.permute.xlu1 %866  ;;  %v952_v6 = vpop.permute.xlu0 %951  ;;  %v1756_v18 = vcombine.low %v1307_v38, %v1309_v58  ;;  %v1763_v50 = vrot.slane %v1755_v40, %v4400_v49 }
 0x112   : > { %v1238_v52 = vsel %vm1236_vm11, %v1209_v25, %v952_v6  ;;  %v1210_v55 = vsel %vm1207_vm10, %v1181_v28, %v867_v31  ;;  %v5677_v31 = vmov 0.0  }
 0x113   : > { %v1310_v23 = vcombine.high %v1238_v52, %v1238_v52  ;;  %v1317_v19 = vrot.slane %v1238_v52, %v4400_v49  ;;  %703 = vrot.lane.b32.xlu1 %v4006_v33, %s3674_s25  ;;  %815 = vrot.lane.b32.xlu0 %v3924_v60, %s3675_s26  ;;  %v1770_v33 = vrot.slane %v1756_v18, %v4400_v49 }
 0x114   : > { %v1066_v52 = vsel %vm1062_vm4, %v1037_v2, %v4268_v63 }
 0x115   : > { %v1325_v14 = vcombine.high %v1317_v19, %v1317_v19  ;;  %v522_v61 = vpop.permute.xlu1 %521  ;;  %v954_v21 = vpop.permute.xlu0 %953  ;;  %v1324_v51 = vrot.slane %v1310_v23, %v4400_v49  ;;  %v1771_v22 = vcombine.low %v1763_v50, %v1770_v33 }
 0x116   : > { %v1239_v11 = vsel %vm1236_vm11, %v1210_v55, %v954_v21  ;;  %v1095_v5 = vsel %vm1091_vm6, %v1066_v52, %v522_v61 }
 0x117   : > { %v1772_v44 = vcombine.low %v1317_v19, %v1325_v14  ;;  %v4442_v39 = vrot.slane %v1239_v11, %v4400_v49  ;;  %900 = vrot.lane.b32.xlu1 %v3917_v57, %s3676_s27  ;;  %878 = vrot.lane.b32.xlu0 %v3842_v36, %s3676_s27  ;;  %v1326_v23 = vcombine.high %v1239_v11, %v1239_v11 }
 0x119   : > { %v1773_v46 = vcombine.low %v1324_v51, %v4442_v39  ;;  %v609_v38 = vpop.permute.xlu1 %608  ;;  %v524_v13 = vpop.permute.xlu0 %523  ;;  %v1780_v12 = vrot.slane %v1772_v44, %v4400_v49  ;;  %v1340_v55 = vrot.slane %v1326_v23, %v4400_v49  ;;  %v1341_v11 = vcombine.high %v4442_v39, %v4442_v39  ;;  %v5678_v23 = vld [vmem:[#allocation14_spill] sm:$0xff] }
 0x11a   : > { %v1124_v18 = vsel %vm1120_vm7, %v1095_v5, %v609_v38 }
 0x11b   : > { %v1787_v1 = vrot.slane %v1773_v46, %v4400_v49  ;;  %789 = vrot.lane.b32.xlu1 %v3795_v24, %s3675_s26  ;;  %902 = vrot.lane.b32.xlu0 %v3950_v10, %s3676_s27  ;;  %v1342_v33 = vcombine.high %v1340_v55, %v1340_v55  ;;  %v1789_v39 = vcombine.low %v1341_v11, %v1340_v55 }
 0x11d   : > { %v1788_v43 = vcombine.low %v1780_v12, %v1787_v1  ;;  %v696_v62 = vpop.permute.xlu1 %695  ;;  %v611_v9 = vpop.permute.xlu0 %610 }
 0x11e   : > { %v1153_v4 = vsel %vm1149_vm8, %v1124_v18, %v696_v62  ;;  %v5681_v18 = vld [vmem:[#allocation16_spill] sm:$0xff] }
 0x11f   : > { %987 = vrot.lane.b32.xlu1 %v4090_v34, %s3678_s30  ;;  %965 = vrot.lane.b32.xlu0 %v4039_v37, %s3678_s30  ;;  %v2196_v20 = vpack.c.bf16 %v1788_v43, %v1771_v22 }
 0x121   : > { %v782_v58 = vpop.permute.xlu1 %781  ;;  %3559 = vmatmul.mubr.msk.bf16.vlgmr.msra.gmra.mxu0 %vm2224_vm12, %v2196_v20  ;;  %v698_v25 = vpop.permute.xlu0 %697 }
 0x122   : > { %3562 = vmatprep.mubr.msk.bf16.mxu0 %vm3680_vm3, %v5677_v31  ;;  %v1182_v63 = vsel %vm1178_vm9, %v1153_v4, %v782_v58 }
 0x123   : > { %876 = vrot.lane.b32.xlu1 %v3809_v27, %s3676_s27  ;;  %989 = vrot.lane.b32.xlu0 %v4111_v41, %s3678_s30 }
 0x125   : > { %v4468_v6 = vpop.permute.xlu1 %547  ;;  %v784_v15 = vpop.permute.xlu0 %783 }
 0x127   : > { %535 = vrot.lane.b32.xlu1 %v3816_v30, %s3672_s23  ;;  %963 = vrot.lane.b32.xlu0 %v4018_v42, %s3678_s30  ;;  %v1067_v30 = vsel %vm1062_vm4, %v1038_v0, %v4278_v53 }
 0x128   : > { %v1096_v14 = vsel %vm1091_vm6, %v1067_v30, %v524_v13  ;;  %v5682_v30 = vld [vmem:[#allocation9_spill] sm:$0xff] }
 0x129   : > { %v871_v19 = vpop.permute.xlu1 %870  ;;  %v869_v28 = vpop.permute.xlu0 %868  ;;  %v1125_v21 = vsel %vm1120_vm7, %v1096_v14, %v611_v9  ;;  %v5683_v14 = vld [vmem:[#allocation18_spill] sm:$0xff] }
 0x12a   : > { %v1211_v61 = vsel %vm1207_vm10, %v1182_v63, %v869_v28 }
 0x12b   : > { %559 = vrot.lane.b32.xlu1 %v3924_v60, %s3672_s23  ;;  %557 = vrot.lane.b32.xlu0 %v3903_v54, %s3672_s23  ;;  %v1154_v54 = vsel %vm1149_vm8, %v1125_v21, %v698_v25 }
 0x12c   : > { %v1183_v51 = vsel %vm1178_vm9, %v1154_v54, %v784_v15 }
 0x12d   : > { %v956_v7 = vpop.permute.xlu1 %955  ;;  %v4495_v35 = vpop.permute.xlu0 %634  ;;  %v1212_v44 = vsel %vm1207_vm10, %v1183_v51, %v871_v19  ;;  %v5679_v19 = vld [vmem:[#allocation5_spill] sm:$0xff] }
 0x12e   : > { %v1240_v60 = vsel %vm1236_vm11, %v1211_v61, %v956_v7  ;;  %v5684_v61 = vld [vmem:[#allocation15_spill] sm:$0xff]  ;;  %v5688_v51 = vld [vmem:[#allocation21_spill] sm:$0xff] }
 0x12f   : > { %v1343_v40 = vcombine.high %v1240_v60, %v1240_v60  ;;  %v1350_v53 = vrot.slane %v1240_v60, %v4400_v49  ;;  %644 = vrot.lane.b32.xlu1 %v3917_v57, %s3673_s24  ;;  %622 = vrot.lane.b32.xlu0 %v3842_v36, %s3673_s24  ;;  %v5685_v60 = vld [vmem:[#allocation3_spill] sm:$0xff] }
 0x131   : > { %v1357_v46 = vrot.slane %v1343_v40, %v4400_v49  ;;  %v1358_v38 = vcombine.high %v1350_v53, %v1350_v53  ;;  %v4510_v13 = vpop.permute.xlu1 %549  ;;  %v958_v50 = vpop.permute.xlu0 %957  ;;  %v1790_v57 = vcombine.low %v1342_v33, %v1350_v53  ;;  %v5687_v53 = vld [vmem:[#allocation8_spill] sm:$0xff] }
 0x132   : > { %v4513_v12 = vsel %vm1236_vm11, %v1212_v44, %v958_v50  ;;  %v1050_v11 = vsel %vm1033_vm5, %v5687_v53, %v4214_v59  ;;  %v5689_v59 = vld [vmem:[#allocation28_spill] sm:$0xff] }
 0x133   : > { %v1366_v36 = vrot.slane %v4513_v12, %v4400_v49  ;;  %533 = vrot.lane.b32.xlu1 %v3795_v24, %s3672_s23  ;;  %646 = vrot.lane.b32.xlu0 %v3950_v10, %s3673_s24  ;;  %v1806_v1 = vcombine.low %v1358_v38, %v1357_v46  ;;  %v1804_v9 = vrot.slane %v1790_v57, %v4400_v49 }
 0x134   : > { %v1797_v24 = vrot.slane %v1789_v39, %v4400_v49  ;;  %v1079_v44 = vsel %vm1062_vm4, %v1050_v11, %v4326_v26 }
 0x135   : > { %v1374_v22 = vcombine.high %v1366_v36, %v1366_v36  ;;  %v4521_v43 = vpop.permute.xlu1 %636  ;;  %v722_v62 = vpop.permute.xlu0 %721  ;;  %v1814_v58 = vrot.slane %v1806_v1, %v4400_v49  ;;  %v1108_v38 = vsel %vm1091_vm6, %v1079_v44, %v4468_v6  ;;  %v5690_v6 = vld [vmem:[#allocation7_spill] sm:$0xff] }
 0x136   : > { %v1805_v2 = vcombine.low %v1797_v24, %v1804_v9  ;;  %v1137_v50 = vsel %vm1120_vm7, %v1108_v38, %v4495_v35  ;;  %v1051_v35 = vsel %vm1033_vm5, %v5690_v6, %v4212_v16 }
 0x137   : > { %v1807_v20 = vcombine.low %v1366_v36, %v1374_v22  ;;  %731 = vrot.lane.b32.xlu1 %v4090_v34, %s3674_s25  ;;  %709 = vrot.lane.b32.xlu0 %v4039_v37, %s3674_s25  ;;  %v1166_v57 = vsel %vm1149_vm8, %v1137_v50, %v722_v62  ;;  %v1359_v36 = vcombine.high %v4513_v12, %v4513_v12 }
 0x138   : > { %v1080_v62 = vsel %vm1062_vm4, %v1051_v35, %v4324_v17 }
 0x139   : > { %v1821_v10 = vrot.slane %v1807_v20, %v4400_v49  ;;  %v4531_v25 = vpop.permute.xlu1 %525  ;;  %v808_v15 = vpop.permute.xlu0 %807  ;;  %v1109_v12 = vsel %vm1091_vm6, %v1080_v62, %v4510_v13  ;;  %v5691_v20 = vld [vmem:[#allocation19_spill] sm:$0xff]  ;;  %v1373_v24 = vrot.slane %v1359_v36, %v4400_v49 }
 0x13a   : > { %v1195_v26 = vsel %vm1178_vm9, %v1166_v57, %v808_v15  ;;  %v1138_v16 = vsel %vm1120_vm7, %v1109_v12, %v4521_v43  ;;  %v5694_v43 = vld [vmem:[#allocation4_spill] sm:$0xff] }
 0x13b   : > { %v1822_v52 = vcombine.low %v1814_v58, %v1821_v10  ;;  %620 = vrot.lane.b32.xlu1 %v3809_v27, %s3673_s24  ;;  %733 = vrot.lane.b32.xlu0 %v4111_v41, %s3674_s25  ;;  %v5680_v41 = vld [vmem:[#allocation2_spill] sm:$0xff] }
 0x13d   : > { %v4537_v34 = vpop.permute.xlu1 %551  ;;  %v4539_v37 = vpop.permute.xlu0 %527  ;;  %v2197_v5 = vpack.c.bf16 %v1822_v52, %v1805_v2  ;;  %v3637_v2 = vld [vmem:[%s3721_s20 + $0x28] sm:$0xff]  ;;  %v5692_v52 = vld [vmem:[#allocation29_spill] sm:$0xff] }
 0x13f   : > { %817 = vrot.lane.b32.xlu1 %v5678_v23, %s3675_s26  ;;  %3563 = vmatmul.mubr.msk.bf16.gmra.mxu0 %vm2224_vm12, %v2197_v5  ;;  %v1039_v5 = vsel %vm1033_vm5, %v3637_v2, %v5692_v52 }
 0x140   : > { %795 = vrot.lane.b32.xlu0 %v5679_v19, %s3675_s26  ;;  %3566 = vmatprep.mubr.msk.bf16.mxu0 %vm3680_vm3, %v5677_v31 }
 0x141   : > { %v895_v27 = vpop.permute.xlu1 %894  ;;  %v724_v28 = vpop.permute.xlu0 %723 }
 0x142   : > { %v1224_v22 = vsel %vm1207_vm10, %v1195_v26, %v895_v27  ;;  %v1167_v17 = vsel %vm1149_vm8, %v1138_v16, %v724_v28  ;;  %v3638_v27 = vld [vmem:[%s3721_s20 + $0x30] sm:$0xff]  ;;  %v1068_v28 = vsel %vm1062_vm4, %v1039_v5, %v4276_v8 }
 0x143   : > { %537 = vrot.lane.b32.xlu1 %v5680_v41, %s3672_s23 }
 0x144   : > { %819 = vrot.lane.b32.xlu0 %v5681_v18, %s3675_s26 }
 0x145   : > { %v615_v0 = vpop.permute.xlu1 %614  ;;  %v613_v4 = vpop.permute.xlu0 %612 }
 0x147   : > { %882 = vrot.lane.b32.xlu1 %v5682_v30, %s3676_s27 }
 0x148   : > { %707 = vrot.lane.b32.xlu0 %v4018_v42, %s3674_s25  ;;  %v5686_v42 = vld [vmem:[#allocation26_spill] sm:$0xff] }
 0x149   : > { %v810_v63 = vpop.permute.xlu1 %809  ;;  %v639_v55 = vpop.permute.xlu0 %638 }
 0x14b   : > { %906 = vrot.lane.b32.xlu1 %v5683_v14, %s3676_s27 }
 0x14c   : > { %904 = vrot.lane.b32.xlu0 %v5684_v61, %s3676_s27 }
 0x14d   : > { %v700_v7 = vpop.permute.xlu1 %699  ;;  %v982_v21 = vpop.permute.xlu0 %981 }
 0x14e   : > { %v1253_v9 = vsel %vm1236_vm11, %v1224_v22, %v982_v21  ;;  %v1196_v21 = vsel %vm1178_vm9, %v1167_v17, %v810_v63 }
 0x14f   : > { %793 = vrot.lane.b32.xlu1 %v5680_v41, %s3675_s26  ;;  %v1557_v15 = vcombine.high %v1253_v9, %v1253_v9  ;;  %v5693_v41 = vld [vmem:[#allocation31_spill] sm:$0xff] }
 0x150   : > { %624 = vrot.lane.b32.xlu0 %v5685_v60, %s3673_s24  ;;  %v1040_v13 = vsel %vm1033_vm5, %v3638_v27, %v5693_v41 }
 0x151   : > { %v4564_v54 = vpop.permute.xlu1 %725  ;;  %v702_v40 = vpop.permute.xlu0 %701 }
 0x153   : > { %991 = vrot.lane.b32.xlu1 %v5686_v42, %s3678_s30 }
 0x154   : > { %969 = vrot.lane.b32.xlu0 %v5688_v51, %s3678_s30 }
 0x155   : > { %v786_v33 = vpop.permute.xlu1 %785  ;;  %v897_v46 = vpop.permute.xlu0 %896 }
 0x156   : > { %v1225_v11 = vsel %vm1207_vm10, %v1196_v21, %v897_v46 }
 0x157   : > { %563 = vrot.lane.b32.xlu1 %v5681_v18, %s3672_s23  ;;  %v1052_v18 = vsel %vm1033_vm5, %v3870_v45, %v4222_v3  ;;  %v1375_v45 = vcombine.high %v1373_v24, %v1373_v24  ;;  %v1097_v3 = vsel %vm1091_vm6, %v1068_v28, %v4531_v25  ;;  %v4680_v28 = vld [vmem:[%s3721_s20 + $0xe0] sm:$0xff] }
 0x158   : > { %993 = vrot.lane.b32.xlu0 %v5689_v59, %s3678_s30  ;;  %v1081_v53 = vsel %vm1062_vm4, %v1052_v18, %v4334_v47  ;;  %v1126_v46 = vsel %vm1120_vm7, %v1097_v3, %v613_v4 }
 0x159   : > { %v812_v39 = vpop.permute.xlu1 %811  ;;  %v788_v1 = vpop.permute.xlu0 %787  ;;  %v1155_v25 = vsel %vm1149_vm8, %v1126_v46, %v700_v7  ;;  %v1823_v4 = vcombine.low %v1373_v24, %v1375_v45 }
 0x15a   : > { %v1184_v36 = vsel %vm1178_vm9, %v1155_v25, %v786_v33 }
 0x15b   : > { %880 = vrot.lane.b32.xlu1 %v5685_v60, %s3676_s27  ;;  %v1069_v60 = vsel %vm1062_vm4, %v1040_v13, %v4286_v29  ;;  %v1110_v29 = vsel %vm1091_vm6, %v1081_v53, %v4537_v34 }
 0x15c   : > { %711 = vrot.lane.b32.xlu0 %v5691_v20, %s3674_s25  ;;  %v1098_v63 = vsel %vm1091_vm6, %v1069_v60, %v4539_v37  ;;  %v1139_v50 = vsel %vm1120_vm7, %v1110_v29, %v639_v55  ;;  %v1564_v37 = vrot.slane %v1253_v9, %v4400_v49  ;;  %v1831_v60 = vrot.slane %v1823_v4, %v4400_v49 }
 0x15d   : > { %v873_v58 = vpop.permute.xlu1 %872  ;;  %v984_v10 = vpop.permute.xlu0 %983  ;;  %v1127_v47 = vsel %vm1120_vm7, %v1098_v63, %v615_v0  ;;  %v1168_v55 = vsel %vm1149_vm8, %v1139_v50, %v4564_v54 }
 0x15e   : > { %v1254_v8 = vsel %vm1236_vm11, %v1225_v11, %v984_v10  ;;  %v1156_v57 = vsel %vm1149_vm8, %v1127_v47, %v702_v40  ;;  %v1213_v7 = vsel %vm1207_vm10, %v1184_v36, %v873_v58  ;;  %v1197_v33 = vsel %vm1178_vm9, %v1168_v55, %v812_v39  ;;  %v4700_v36 = vld [vmem:[%s3721_s20 + $0xe8] sm:$0xff] }
 0x15f   : > { %797 = vrot.lane.b32.xlu1 %v5694_v43, %s3675_s26  ;;  %v1185_v34 = vsel %vm1178_vm9, %v1156_v57, %v788_v1  ;;  %v1581_v0 = vrot.slane %v1254_v8, %v4400_v49  ;;  %v1572_v54 = vcombine.high %v1564_v37, %v1564_v37  ;;  %v5695_v43 = vld [vmem:[#allocation6_spill] sm:$0xff] }
 0x160   : > { %650 = vrot.lane.b32.xlu0 %v5683_v14, %s3673_s24  ;;  %v1571_v14 = vrot.slane %v1557_v15, %v4400_v49 }
 0x161   : > { %v899_v44 = vpop.permute.xlu1 %898  ;;  %v875_v38 = vpop.permute.xlu0 %874  ;;  %v1589_v24 = vcombine.high %v1581_v0, %v1581_v0 }
 0x162   : > { %v1214_v40 = vsel %vm1207_vm10, %v1185_v34, %v875_v38  ;;  %v1573_v6 = vcombine.high %v1571_v14, %v1571_v14  ;;  %v1226_v16 = vsel %vm1207_vm10, %v1197_v33, %v899_v44  ;;  %v4703_v34 = vld [vmem:[%s3721_s20 + $0x78] sm:$0xff]  ;;  %v686_v33 = vrot.slane %v4680_v28, 2 }
 0x163   : > { %539 = vrot.lane.b32.xlu1 %v5679_v19, %s3672_s23  ;;  %v2010_v18 = vcombine.low %v1581_v0, %v1589_v24  ;;  %v5696_v0 = vld [vmem:[#allocation20_spill] sm:$0xff]  ;;  %v5697_v24 = vld [vmem:[#allocation17_spill] sm:$0xff] }
 0x164   : > { %967 = vrot.lane.b32.xlu0 %v5691_v20, %s3678_s30  ;;  %v1574_v20 = vcombine.high %v1254_v8, %v1254_v8 }
 0x165   : > { %v962_v19 = vpop.permute.xlu1 %961  ;;  %v960_v26 = vpop.permute.xlu0 %959  ;;  %v2018_v47 = vrot.slane %v2010_v18, %v4400_v49 }
 0x166   : > { %v1243_v1 = vsel %vm1236_vm11, %v1214_v40, %v962_v19  ;;  %v1242_v35 = vsel %vm1236_vm11, %v1213_v7, %v960_v26  ;;  %v1588_v13 = vrot.slane %v1574_v20, %v4400_v49  ;;  %v4718_v40 = vrot.slane %v4700_v36, 1 }
 0x167   : > { %v1392_v22 = vcombine.high %v1243_v1, %v1243_v1  ;;  %v1399_v62 = vrot.slane %v1243_v1, %v4400_v49  ;;  %v1376_v9 = vcombine.high %v1242_v35, %v1242_v35  ;;  %v1383_v12 = vrot.slane %v1242_v35, %v4400_v49  ;;  %737 = vrot.lane.b32.xlu1 %v5689_v59, %s3674_s25 }
 0x168   : > { %561 = vrot.lane.b32.xlu0 %v5678_v23, %s3672_s23  ;;  %v1994_v59 = vcombine.low %v1571_v14, %v1573_v6  ;;  %v1993_v23 = vcombine.low %v1564_v37, %v1572_v54  ;;  %v4736_v35 = vrot.slane %v4700_v36, 2 }
 0x169   : > { %v4661_v39 = vrot.slane %v1392_v22, %v4400_v49  ;;  %v1407_v58 = vcombine.high %v1399_v62, %v1399_v62  ;;  %v1390_v10 = vrot.slane %v1376_v9, %v4400_v49  ;;  %v1391_v17 = vcombine.high %v1383_v12, %v1383_v12  ;;  %v4664_v15 = vpop.permute.xlu1 %531  ;;  %v986_v2 = vpop.permute.xlu0 %985  ;;  %v4744_v22 = vld [vmem:[%s3721_s20 + $0x80] sm:$0xff] }
 0x16a   : > { %v4667_v52 = vsel %vm1236_vm11, %v1226_v16, %v986_v2  ;;  %v2008_v63 = vrot.slane %v1994_v59, %v4400_v49  ;;  %v2001_v29 = vrot.slane %v1993_v23, %v4400_v49  ;;  %v5698_v16 = vld [vmem:[#allocation11_spill] sm:$0xff]  ;;  %v5699_v2 = vld [vmem:[#allocation33_spill] sm:$0xff] }
 0x16b   : > { %v1841_v5 = vcombine.low %v1407_v58, %v4661_v39  ;;  %v1824_v27 = vcombine.low %v1383_v12, %v1391_v17  ;;  %v1840_v41 = vcombine.low %v1390_v10, %v1399_v62  ;;  %626 = vrot.lane.b32.xlu1 %v5682_v30, %s3673_s24  ;;  %v4675_v21 = vrot.slane %v4667_v52, %v4400_v49  ;;  %v3642_v17 = vld [vmem:[%s3721_s20 + $0x40] sm:$0xff] }
 0x16c   : > { %884 = vrot.lane.b32.xlu0 %v5695_v43, %s3676_s27  ;;  %v2009_v57 = vcombine.low %v2001_v29, %v2008_v63  ;;  %v4750_v12 = vsel %vm386_vm1, %v686_v33, %v4736_v35  ;;  %v1042_v59 = vsel %vm1033_vm5, %v3642_v17, %v5699_v2  ;;  %v1590_v18 = vcombine.high %v4667_v52, %v4667_v52  ;;  %v5701_v52 = vld [vmem:[#allocation41_spill] sm:$0xff] }
 0x16d   : > { %v1855_v53 = vrot.slane %v1841_v5, %v4400_v49  ;;  %v1838_v11 = vrot.slane %v1824_v27, %v4400_v49  ;;  %v1848_v30 = vrot.slane %v1840_v41, %v4400_v49  ;;  %v4686_v45 = vpop.permute.xlu1 %555  ;;  %v4688_v3 = vpop.permute.xlu0 %553  ;;  %v2011_v8 = vcombine.low %v1588_v13, %v4675_v21  ;;  %v4766_v5 = vld [vmem:[%s3721_s20 + $0x98] sm:$0xff]  ;;  %v5700_v41 = vld [vmem:[#allocation23_spill] sm:$0xff] }
 0x16e   : > { %v1053_v27 = vsel %vm1033_vm5, %v4766_v5, %v4220_v48  ;;  %v1071_v23 = vsel %vm1062_vm4, %v1042_v59, %v4294_v32  ;;  %v1605_v17 = vcombine.high %v4675_v21, %v4675_v21  ;;  %v5706_v59 = vld [vmem:[#allocation10_spill] sm:$0xff] }
 0x16f   : > { %v1839_v44 = vcombine.low %v1831_v60, %v1838_v11  ;;  %823 = vrot.lane.b32.xlu1 %v4680_v28, %s3675_s26  ;;  %v1856_v38 = vcombine.low %v1848_v30, %v1855_v53  ;;  %v2025_v46 = vrot.slane %v2011_v8, %v4400_v49  ;;  %v1082_v13 = vsel %vm1062_vm4, %v1053_v27, %v4332_v56  ;;  %v3645_v30 = vld [vmem:[%s3721_s20 + $0xa0] sm:$0xff] }
 0x170   : > { %648 = vrot.lane.b32.xlu0 %v5684_v61, %s3673_s24  ;;  %v599_v61 = vrot.slane %v4680_v28, 1  ;;  %v1100_v48 = vsel %vm1091_vm6, %v1071_v23, %v4664_v15  ;;  %v1111_v60 = vsel %vm1091_vm6, %v1082_v13, %v4688_v3  ;;  %v1054_v63 = vsel %vm1033_vm5, %v3645_v30, %v5701_v52  ;;  %v5702_v15 = vld [vmem:[#allocation57_spill] sm:$0xff] }
 0x171   : > { %v641_v14 = vpop.permute.xlu1 %640  ;;  %v619_v50 = vpop.permute.xlu0 %618  ;;  %v2198_v25 = vpack.c.bf16 %v1856_v38, %v1839_v44  ;;  %v2026_v37 = vcombine.low %v2018_v47, %v2025_v46  ;;  %v1083_v3 = vsel %vm1062_vm4, %v1054_v63, %v5702_v15  ;;  %v1604_v38 = vrot.slane %v1590_v18, %v4400_v49  ;;  %v5703_v46 = vld [vmem:[#allocation27_spill] sm:$0xff] }
 0x172   : > { %v601_v6 = vsel %vm259_vm0, %v599_v61, %v4718_v40  ;;  %v1140_v32 = vsel %vm1120_vm7, %v1111_v60, %v641_v14  ;;  %v1129_v56 = vsel %vm1120_vm7, %v1100_v48, %v619_v50  ;;  %v1112_v14 = vsel %vm1091_vm6, %v1083_v3, %v4686_v45 }
 0x173   : > { %541 = vrot.lane.b32.xlu1 %v4703_v34, %s3672_s23  ;;  %3567 = vmatmul.mubr.msk.bf16.gmra.mxu0 %vm2224_vm12, %v2198_v25  ;;  %v2203_v4 = vpack.c.bf16 %v2026_v37, %v2009_v57  ;;  %v3646_v37 = vld [vmem:[%s3721_s20 + $0x38] sm:$0xff]  ;;  %v1606_v2 = vcombine.high %v1604_v38, %v1604_v38  ;;  %v2027_v15 = vcombine.low %v1605_v17, %v1604_v38 }
 0x174   : > { %971 = vrot.lane.b32.xlu0 %v5696_v0, %s3678_s30  ;;  %3570 = vmatprep.mubr.msk.bf16.mxu0 %vm3680_vm3, %v5677_v31 }
 0x175   : > { %v4713_v55 = vpop.permute.xlu1 %529  ;;  %v4715_v7 = vpop.permute.xlu0 %642  ;;  %3587 = vmatmul.mubr.msk.bf16.vlgmr.msra.gmra.mxu1 %vm2224_vm12, %v2203_v4 }
 0x176   : > { %3590 = vmatprep.mubr.msk.bf16.mxu1 %vm3680_vm3, %v5677_v31  ;;  %v1141_v61 = vsel %vm1120_vm7, %v1112_v14, %v4715_v7 }
 0x177   : > { %735 = vrot.lane.b32.xlu1 %v5686_v42, %s3674_s25 }
 0x178   : > { %713 = vrot.lane.b32.xlu0 %v5688_v51, %s3674_s25  ;;  %v4739_v51 = vld [vmem:[%s3721_s20 + $0xd8] sm:$0xff] }
 0x179   : > { %v728_v19 = vpop.permute.xlu1 %727  ;;  %v706_v26 = vpop.permute.xlu0 %705 }
 0x17a   : > { %v1169_v8 = vsel %vm1149_vm8, %v1140_v32, %v728_v19  ;;  %v1158_v44 = vsel %vm1149_vm8, %v1129_v56, %v706_v26  ;;  %v5707_v56 = vld [vmem:[#allocation35_spill] sm:$0xff] }
 0x17b   : > { %628 = vrot.lane.b32.xlu1 %v5695_v43, %s3673_s24  ;;  %v4780_v43 = vld [vmem:[%s3721_s20 + $0x88] sm:$0xff] }
 0x17c   : > { %910 = vrot.lane.b32.xlu0 %v601_v6, %s3676_s27 }
 0x17d   : > { %v4733_v1 = vpop.permute.xlu1 %616  ;;  %v730_v42 = vpop.permute.xlu0 %729 }
 0x17e   : > { %v1170_v33 = vsel %vm1149_vm8, %v1141_v61, %v730_v42 }
 0x17f   : > { %821 = vrot.lane.b32.xlu1 %v4739_v51, %s3675_s26 }
 0x180   : > { %799 = vrot.lane.b32.xlu0 %v4744_v22, %s3675_s26 }
 0x181   : > { %v814_v62 = vpop.permute.xlu1 %813  ;;  %v792_v9 = vpop.permute.xlu0 %791 }
 0x182   : > { %v1198_v29 = vsel %vm1178_vm9, %v1169_v8, %v814_v62  ;;  %v1187_v47 = vsel %vm1178_vm9, %v1158_v44, %v792_v9  ;;  %v5708_v8 = vld [vmem:[#allocation22_spill] sm:$0xff]  ;;  %v5709_v44 = vld [vmem:[#allocation51_spill] sm:$0xff] }
 0x183   : > { %715 = vrot.lane.b32.xlu1 %v5696_v0, %s3674_s25  ;;  %v5704_v0 = vld [vmem:[#allocation30_spill] sm:$0xff] }
 0x184   : > { %997 = vrot.lane.b32.xlu0 %v4750_v12, %s3678_s30  ;;  %v1041_v4 = vsel %vm1033_vm5, %v3646_v37, %v5704_v0 }
 0x185   : > { %v4756_v54 = vpop.permute.xlu1 %703  ;;  %v816_v20 = vpop.permute.xlu0 %815 }
 0x186   : > { %v1199_v7 = vsel %vm1178_vm9, %v1170_v33, %v816_v20 }
 0x187   : > { %908 = vrot.lane.b32.xlu1 %v5697_v24, %s3676_s27 }
 0x188   : > { %886 = vrot.lane.b32.xlu0 %v5698_v16, %s3676_s27 }
 0x189   : > { %v901_v58 = vpop.permute.xlu1 %900  ;;  %v879_v10 = vpop.permute.xlu0 %878 }
 0x18a   : > { %v1227_v50 = vsel %vm1207_vm10, %v1198_v29, %v901_v58  ;;  %v1216_v25 = vsel %vm1207_vm10, %v1187_v47, %v879_v10  ;;  %v5705_v58 = vld [vmem:[#allocation48_spill] sm:$0xff] }
 0x18b   : > { %973 = vrot.lane.b32.xlu1 %v5700_v41, %s3678_s30  ;;  %v1070_v10 = vsel %vm1062_vm4, %v1041_v4, %v5705_v58  ;;  %v1408_v4 = vcombine.high %v4661_v39, %v4661_v39 }
 0x18c   : > { %801 = vrot.lane.b32.xlu0 %v4780_v43, %s3675_s26  ;;  %v1099_v42 = vsel %vm1091_vm6, %v1070_v10, %v4713_v55 }
 0x18d   : > { %v790_v53 = vpop.permute.xlu1 %789  ;;  %v903_v11 = vpop.permute.xlu0 %902  ;;  %v1128_v21 = vsel %vm1120_vm7, %v1099_v42, %v4733_v1 }
 0x18e   : > { %v1228_v27 = vsel %vm1207_vm10, %v1199_v7, %v903_v11  ;;  %v1157_v55 = vsel %vm1149_vm8, %v1128_v21, %v4756_v54  ;;  %v3647_v11 = vld [vmem:[%s3721_s20 + $0x50] sm:$0xff] }
 0x18f   : > { %567 = vrot.lane.b32.xlu1 %v4680_v28, %s3672_s23  ;;  %v1044_v30 = vsel %vm1033_vm5, %v3647_v11, %v5707_v56  ;;  %v1186_v52 = vsel %vm1178_vm9, %v1157_v55, %v790_v53 }
 0x190   : > { %995 = vrot.lane.b32.xlu0 %v5703_v46, %s3678_s30  ;;  %v1073_v54 = vsel %vm1062_vm4, %v1044_v30, %v5709_v44 }
 0x191   : > { %v988_v28 = vpop.permute.xlu1 %987  ;;  %v966_v57 = vpop.permute.xlu0 %965 }
 0x192   : > { %v1256_v19 = vsel %vm1236_vm11, %v1227_v50, %v988_v28  ;;  %v1245_v26 = vsel %vm1236_vm11, %v1216_v25, %v966_v57 }
 0x193   : > { %v1607_v45 = vcombine.high %v1256_v19, %v1256_v19  ;;  %v1614_v62 = vrot.slane %v1256_v19, %v4400_v49  ;;  %v1425_v9 = vcombine.high %v1245_v26, %v1245_v26  ;;  %654 = vrot.lane.b32.xlu1 %v601_v6, %s3673_s24  ;;  %v1432_v6 = vrot.slane %v1245_v26, %v4400_v49 }
 0x194   : > { %888 = vrot.lane.b32.xlu0 %v5706_v59, %s3676_s27 }
 0x195   : > { %v1439_v23 = vrot.slane %v1425_v9, %v4400_v49  ;;  %v877_v13 = vpop.permute.xlu1 %876  ;;  %v990_v18 = vpop.permute.xlu0 %989  ;;  %v1621_v20 = vrot.slane %v1607_v45, %v4400_v49  ;;  %v1622_v48 = vcombine.high %v1614_v62, %v1614_v62  ;;  %v2028_v1 = vcombine.low %v1606_v2, %v1614_v62  ;;  %v229_v2 = vld [vmem:[%s3721_s20 + $0xf0] sm:$0xff] }
 0x196   : > { %v4834_v60 = vsel %vm1236_vm11, %v1228_v27, %v990_v18  ;;  %v1440_v3 = vcombine.high %v1432_v6, %v1432_v6 }
 0x197   : > { %v1441_v32 = vcombine.high %v1439_v23, %v1439_v23  ;;  %543 = vrot.lane.b32.xlu1 %v4744_v22, %s3672_s23  ;;  %v1630_v63 = vrot.slane %v4834_v60, %v4400_v49  ;;  %v1215_v22 = vsel %vm1207_vm10, %v1186_v52, %v877_v13  ;;  %v2044_v14 = vcombine.low %v1622_v48, %v1621_v20 }
 0x198   : > { %975 = vrot.lane.b32.xlu0 %v5708_v8, %s3678_s30  ;;  %v2042_v38 = vrot.slane %v2028_v1, %v4400_v49  ;;  %v1874_v61 = vcombine.low %v1432_v6, %v1440_v3 }
 0x199   : > { %v536_v29 = vpop.permute.xlu1 %535  ;;  %v964_v47 = vpop.permute.xlu0 %963  ;;  %v1638_v50 = vcombine.high %v1630_v63, %v1630_v63  ;;  %v1875_v28 = vcombine.low %v1439_v23, %v1441_v32  ;;  %v2052_v62 = vrot.slane %v2044_v14, %v4400_v49  ;;  %v4891_v32 = vld [vmem:[%s3721_s20 + $0xf8] sm:$0xff] }
 0x19a   : > { %v4852_v53 = vsel %vm1091_vm6, %v1073_v54, %v536_v29  ;;  %v1244_v25 = vsel %vm1236_vm11, %v1215_v22, %v964_v47  ;;  %v1882_v42 = vrot.slane %v1874_v61, %v4400_v49  ;;  %v860_v56 = vrot.slane %v4891_v32, 1 }
 0x19b   : > { %v1409_v57 = vcombine.high %v1244_v25, %v1244_v25  ;;  %v1416_v37 = vrot.slane %v1244_v25, %v4400_v49  ;;  %741 = vrot.lane.b32.xlu1 %v4750_v12, %s3674_s25  ;;  %v2045_v0 = vcombine.low %v1630_v63, %v1638_v50  ;;  %v2035_v12 = vrot.slane %v2027_v15, %v4400_v49  ;;  %v3649_v50 = vld [vmem:[%s3721_s20 + $0xa8] sm:$0xff]  ;;  %v5710_v25 = vld [vmem:[#allocation40_spill] sm:$0xff] }
 0x19c   : > { %565 = vrot.lane.b32.xlu0 %v4739_v51, %s3672_s23  ;;  %v1889_v39 = vrot.slane %v1875_v28, %v4400_v49  ;;  %v946_v63 = vrot.slane %v229_v2, 2  ;;  %v947_v44 = vrot.slane %v4891_v32, 2  ;;  %v1055_v28 = vsel %vm1033_vm5, %v3649_v50, %v5710_v25 }
 0x19d   : > { %v1423_v19 = vrot.slane %v1409_v57, %v4400_v49  ;;  %v1424_v26 = vcombine.high %v1416_v37, %v1416_v37  ;;  %v4864_v33 = vpop.permute.xlu1 %559  ;;  %v4866_v45 = vpop.permute.xlu0 %557  ;;  %v2059_v9 = vrot.slane %v2045_v0, %v4400_v49  ;;  %v1857_v58 = vcombine.low %v1408_v4, %v1416_v37  ;;  %v5712_v37 = vld [vmem:[#allocation13_spill] sm:$0xff] }
 0x19e   : > { %v2043_v17 = vcombine.low %v2035_v12, %v2042_v38  ;;  %v1890_v21 = vcombine.low %v1882_v42, %v1889_v39  ;;  %v948_v15 = vsel %vm386_vm1, %v946_v63, %v947_v44 }
 0x19f   : > { %v1858_v10 = vcombine.low %v1424_v26, %v1423_v19  ;;  %630 = vrot.lane.b32.xlu1 %v5698_v16, %s3673_s24  ;;  %v2060_v7 = vcombine.low %v2052_v62, %v2059_v9  ;;  %v1865_v27 = vrot.slane %v1857_v58, %v4400_v49  ;;  %v3650_v19 = vld [vmem:[%s3721_s20 + $0xb0] sm:$0xff]  ;;  %v5713_v26 = vld [vmem:[#allocation43_spill] sm:$0xff] }
 0x1a0   : > { %483 = vrot.lane.b32.xlu0 %v5703_v46, %s3671_s22  ;;  %v1056_v12 = vsel %vm1033_vm5, %v3650_v19, %v5713_v26  ;;  %v5714_v62 = vld [vmem:[#allocation59_spill] sm:$0xff] }
 0x1a1   : > { %v1872_v6 = vrot.slane %v1858_v10, %v4400_v49  ;;  %v645_v23 = vpop.permute.xlu1 %644  ;;  %v4880_v13 = vpop.permute.xlu0 %622  ;;  %v2204_v18 = vpack.c.bf16 %v2060_v7, %v2043_v17 }
 0x1a2   : > { %v1131_v19 = vsel %vm1120_vm7, %v4852_v53, %v4880_v13 }
 0x1a3   : > { %v1873_v20 = vcombine.low %v1865_v27, %v1872_v6  ;;  %827 = vrot.lane.b32.xlu1 %v229_v2, %s3675_s26  ;;  %3591 = vmatmul.mubr.msk.bf16.gmra.mxu1 %vm2224_vm12, %v2204_v18  ;;  %v5715_v6 = vld [vmem:[#allocation25_spill] sm:$0xff] }
 0x1a4   : > { %652 = vrot.lane.b32.xlu0 %v5697_v24, %s3673_s24  ;;  %3594 = vmatprep.mubr.msk.bf16.mxu1 %vm3680_vm3, %v5677_v31  ;;  %v859_v24 = vrot.slane %v229_v2, 1 }
 0x1a5   : > { %v4886_v16 = vpop.permute.xlu1 %533  ;;  %v2199_v48 = vpack.c.bf16 %v1890_v21, %v1873_v20  ;;  %v647_v55 = vpop.permute.xlu0 %646 }
 0x1a7   : > { %569 = vrot.lane.b32.xlu1 %v4700_v36, %s3672_s23  ;;  %3571 = vmatmul.mubr.msk.bf16.gmra.mxu0 %vm2224_vm12, %v2199_v48 }
 0x1a8   : > { %545 = vrot.lane.b32.xlu0 %v4780_v43, %s3672_s23  ;;  %3574 = vmatprep.mubr.msk.bf16.mxu0 %vm3680_vm3, %v5677_v31  ;;  %v861_v43 = vsel %vm259_vm0, %v859_v24, %v860_v56 }
 0x1a9   : > { %v732_v11 = vpop.permute.xlu1 %731  ;;  %v4901_v30 = vpop.permute.xlu0 %709 }
 0x1ab   : > { %739 = vrot.lane.b32.xlu1 %v5703_v46, %s3674_s25 }
 0x1ac   : > { %717 = vrot.lane.b32.xlu0 %v5700_v41, %s3674_s25  ;;  %v3648_v41 = vld [vmem:[%s3721_s20 + $0x90] sm:$0xff] }
 0x1ad   : > { %v4907_v52 = vpop.permute.xlu1 %620  ;;  %v734_v1 = vpop.permute.xlu0 %733 }
 0x1af   : > { %632 = vrot.lane.b32.xlu1 %v5706_v59, %s3673_s24 }
 0x1b0   : > { %914 = vrot.lane.b32.xlu0 %v861_v43, %s3676_s27 }
 0x1b1   : > { %v818_v54 = vpop.permute.xlu1 %817 }
 0x1b2   : > { %v4916_v46 = vpop.permute.xlu0 %795 }
 0x1b3   : > { %803 = vrot.lane.b32.xlu1 %v3648_v41, %s3675_s26 }
 0x1b4   : > { %656 = vrot.lane.b32.xlu0 %v4718_v40, %s3673_s24 }
 0x1b5   : > { %v4925_v59 = vpop.permute.xlu1 %537 }
 0x1b6   : > { %v820_v3 = vpop.permute.xlu0 %819 }
 0x1b7   : > { %1001 = vrot.lane.b32.xlu1 %v948_v15, %s3678_s30 }
 0x1b8   : > { %825 = vrot.lane.b32.xlu0 %v4700_v36, %s3675_s26  ;;  %v5711_v36 = vld [vmem:[#allocation56_spill] sm:$0xff] }
 0x1b9   : > { %v4930_v22 = vpop.permute.xlu1 %882  ;;  %v1084_v57 = vsel %vm1062_vm4, %v1055_v28, %v5711_v36  ;;  %v5718_v36 = vld [vmem:[#allocation24_spill] sm:$0xff] }
 0x1ba   : > { %v4932_v29 = vpop.permute.xlu0 %707  ;;  %v1113_v38 = vsel %vm1091_vm6, %v1084_v57, %v4866_v45  ;;  %v5719_v57 = vld [vmem:[#allocation49_spill] sm:$0xff] }
 0x1bb   : > { %743 = vrot.lane.b32.xlu1 %v4736_v35, %s3674_s25  ;;  %v1142_v4 = vsel %vm1120_vm7, %v1113_v38, %v645_v23 }
 0x1bc   : > { %719 = vrot.lane.b32.xlu0 %v5708_v8, %s3674_s25  ;;  %v1623_v8 = vcombine.high %v4834_v60, %v4834_v60  ;;  %v1085_v60 = vsel %vm1062_vm4, %v1056_v12, %v5714_v62  ;;  %v1160_v12 = vsel %vm1149_vm8, %v1131_v19, %v4901_v30 }
 0x1bd   : > { %v907_v47 = vpop.permute.xlu1 %906  ;;  %v1114_v10 = vsel %vm1091_vm6, %v1085_v60, %v4864_v33  ;;  %v1189_v60 = vsel %vm1178_vm9, %v1160_v12, %v4916_v46 }
 0x1be   : > { %v905_v14 = vpop.permute.xlu0 %904  ;;  %v1637_v39 = vrot.slane %v1623_v8, %v4400_v49  ;;  %v1143_v2 = vsel %vm1120_vm7, %v1114_v10, %v647_v55  ;;  %v1218_v53 = vsel %vm1207_vm10, %v1189_v60, %v4930_v22 }
 0x1bf   : > { %912 = vrot.lane.b32.xlu1 %v4718_v40, %s3676_s27  ;;  %v1171_v40 = vsel %vm1149_vm8, %v1142_v4, %v732_v11 }
 0x1c0   : > { %890 = vrot.lane.b32.xlu0 %v5712_v37, %s3676_s27  ;;  %v1200_v45 = vsel %vm1178_vm9, %v1171_v40, %v818_v54  ;;  %v1639_v21 = vcombine.high %v1637_v39, %v1637_v39 }
 0x1c1   : > { %v4949_v0 = vpop.permute.xlu1 %793  ;;  %v1229_v9 = vsel %vm1207_vm10, %v1200_v45, %v905_v14  ;;  %v5717_v14 = vld [vmem:[#allocation32_spill] sm:$0xff] }
 0x1c2   : > { %v4954_v61 = vpop.permute.xlu0 %624  ;;  %v2061_v54 = vcombine.low %v1637_v39, %v1639_v21  ;;  %v5050_v21 = vld [vmem:[%s5564_s2] ss:$0 sm:$0xff] }
 0x1c3   : > { %829 = vrot.lane.b32.xlu1 %v4891_v32, %s3675_s26 }
 0x1c4   : > { %805 = vrot.lane.b32.xlu0 %v4766_v5, %s3675_s26  ;;  %v1172_v5 = vsel %vm1149_vm8, %v1143_v2, %v734_v1  ;;  %v5716_v1 = vld [vmem:[#allocation12_spill] sm:$0xff]  ;;  %v2069_v8 = vrot.slane %v2061_v54, %v4400_v49  ;;  %v5064_v54 = vld [vmem:[%s5565_s3] ss:$0 sm:$0xff] }
 0x1c5   : > { %v992_v58 = vpop.permute.xlu1 %991  ;;  %v1201_v23 = vsel %vm1178_vm9, %v1172_v5, %v820_v3 }
 0x1c6   : > { %v1258_v17 = vsel %vm1236_vm11, %v1229_v9, %v992_v58  ;;  %v970_v7 = vpop.permute.xlu0 %969  ;;  %v1230_v20 = vsel %vm1207_vm10, %v1201_v23, %v907_v47 }
 0x1c7   : > { %v1647_v42 = vrot.slane %v1258_v17, %v4400_v49  ;;  %999 = vrot.lane.b32.xlu1 %v4736_v35, %s3678_s30  ;;  %v1640_v27 = vcombine.high %v1258_v17, %v1258_v17  ;;  %v1247_v39 = vsel %vm1236_vm11, %v1218_v53, %v970_v7 }
 0x1c8   : > { %977 = vrot.lane.b32.xlu0 %v5715_v6, %s3678_s30  ;;  %v1465_v22 = vrot.slane %v1247_v39, %v4400_v49 }
 0x1c9   : > { %v1655_v18 = vcombine.high %v1647_v42, %v1647_v42  ;;  %v4980_v33 = vpop.permute.xlu1 %563  ;;  %v1654_v35 = vrot.slane %v1640_v27, %v4400_v49 }
 0x1ca   : > { %v994_v48 = vpop.permute.xlu0 %993 }
 0x1cb   : > { %v1259_v55 = vsel %vm1236_vm11, %v1230_v20, %v994_v48  ;;  %916 = vrot.lane.b32.xlu1 %v860_v56, %s3676_s27  ;;  %v2062_v24 = vcombine.low %v1647_v42, %v1655_v18  ;;  %v3651_v56 = vld [vmem:[%s3721_s20 + $0x48] sm:$0xff]  ;;  %v3652_v20 = vld [vmem:[%s3721_s20 + $0x58] sm:$0xff]  ;;  %v5720_v48 = vld [vmem:[#allocation34_spill] sm:$0xff] }
 0x1cc   : > { %v1656_v11 = vcombine.high %v1259_v55, %v1259_v55  ;;  %v1663_v43 = vrot.slane %v1259_v55, %v4400_v49  ;;  %892 = vrot.lane.b32.xlu0 %v5716_v1, %s3676_s27  ;;  %v1043_v50 = vsel %vm1033_vm5, %v3651_v56, %v5717_v14  ;;  %v1045_v55 = vsel %vm1033_vm5, %v3652_v20, %v5720_v48  ;;  %v3653_v20 = vld [vmem:[%s3721_s20 + $0xc0] sm:$0xff]  ;;  %v5722_v48 = vld [vmem:[#allocation45_spill] sm:$0xff] }
 0x1cd   : > { %v881_v63 = vpop.permute.xlu1 %880  ;;  %v2076_v25 = vrot.slane %v2062_v24, %v4400_v49  ;;  %v1072_v37 = vsel %vm1062_vm4, %v1043_v50, %v5719_v57  ;;  %v5721_v24 = vld [vmem:[#allocation50_spill] sm:$0xff]  ;;  %v1473_v57 = vcombine.high %v1465_v22, %v1465_v22 }
 0x1ce   : > { %v4992_v41 = vrot.slane %v1656_v11, %v4400_v49  ;;  %v1671_v15 = vcombine.high %v1663_v43, %v1663_v43  ;;  %v2078_v3 = vcombine.low %v1654_v35, %v1663_v43  ;;  %v712_v47 = vpop.permute.xlu0 %711  ;;  %v1101_v32 = vsel %vm1091_vm6, %v1072_v37, %v4886_v16 }
 0x1cf   : > { %1003 = vrot.lane.b32.xlu1 %v947_v44, %s3678_s30  ;;  %v1130_v26 = vsel %vm1120_vm7, %v1101_v32, %v4907_v52  ;;  %v2077_v16 = vcombine.low %v2069_v8, %v2076_v25  ;;  %v1074_v11 = vsel %vm1062_vm4, %v1045_v55, %v5721_v24  ;;  %v1458_v43 = vcombine.high %v1247_v39, %v1247_v39 }
 0x1d0   : > { %v2079_v28 = vcombine.low %v1671_v15, %v4992_v41  ;;  %979 = vrot.lane.b32.xlu0 %v5718_v36, %s3678_s30  ;;  %v2086_v44 = vrot.slane %v2078_v3, %v4400_v49  ;;  %v1159_v45 = vsel %vm1149_vm8, %v1130_v26, %v4932_v29  ;;  %v1103_v15 = vsel %vm1091_vm6, %v1074_v11, %v4925_v59 }
 0x1d1   : > { %v798_v38 = vpop.permute.xlu1 %797  ;;  %v1188_v9 = vsel %vm1178_vm9, %v1159_v45, %v4949_v0  ;;  %v1132_v14 = vsel %vm1120_vm7, %v1103_v15, %v4954_v61  ;;  %v1472_v36 = vrot.slane %v1458_v43, %v4400_v49  ;;  %v1058_v55 = vsel %vm1033_vm5, %v3653_v20, %v5722_v48 }
 0x1d2   : > { %v2093_v4 = vrot.slane %v2079_v28, %v4400_v49  ;;  %v5011_v40 = vpop.permute.xlu0 %650  ;;  %v1217_v13 = vsel %vm1207_vm10, %v1188_v9, %v881_v63  ;;  %v1161_v25 = vsel %vm1149_vm8, %v1132_v14, %v712_v47 }
 0x1d3   : > { %v1190_v37 = vsel %vm1178_vm9, %v1161_v25, %v798_v38  ;;  %v1908_v38 = vcombine.low %v1473_v57, %v1472_v36 }
 0x1d4   : > { %v2094_v62 = vcombine.low %v2086_v44, %v2093_v4 }
 0x1d5   : > { %v5026_v58 = vpop.permute.xlu1 %539 }
 0x1d6   : > { %v968_v52 = vpop.permute.xlu0 %967  ;;  %v2205_v30 = vpack.c.bf16 %v2094_v62, %v2077_v16  ;;  %v1474_v16 = vcombine.high %v1472_v36, %v1472_v36 }
 0x1d7   : > { %v1246_v29 = vsel %vm1236_vm11, %v1217_v13, %v968_v52 }
 0x1d8   : > { %v1442_v10 = vcombine.high %v1246_v29, %v1246_v29  ;;  %v1449_v46 = vrot.slane %v1246_v29, %v4400_v49  ;;  %3595 = vmatmul.mubr.msk.bf16.gmra.mxu1 %vm2224_vm12, %v2205_v30 }
 0x1d9   : > { %v5035_v0 = vpop.permute.xlu1 %737  ;;  %3598 = vmatprep.mubr.msk.bf16.mxu1 %vm3680_vm3, %v5677_v31 }
 0x1da   : > { %v1456_v17 = vrot.slane %v1442_v10, %v4400_v49  ;;  %v1457_v2 = vcombine.high %v1449_v46, %v1449_v46  ;;  %v5041_v42 = vpop.permute.xlu0 %561 }
 0x1dc   : > { %v1891_v7 = vcombine.low %v1449_v46, %v1457_v2  ;;  %v1892_v5 = vcombine.low %v1456_v17, %v1465_v22  ;;  %v1916_v22 = vrot.slane %v1908_v38, %v4400_v49 }
 0x1dd   : > { %v5043_v27 = vpop.permute.xlu1 %626 }
 0x1de   : > { %v1899_v6 = vrot.slane %v1891_v7, %v4400_v49  ;;  %v1906_v23 = vrot.slane %v1892_v5, %v4400_v49  ;;  %v885_v18 = vpop.permute.xlu0 %884 }
 0x1df   : > { %v1219_v32 = vsel %vm1207_vm10, %v1190_v37, %v885_v18 }
 0x1e0   : > { %v5055_v35 = vcombine.low %v1899_v6, %v1906_v23 }
 0x1e1   : > { %v5059_v1 = vpop.permute.xlu1 %823  ;;  %v2304_v63 = vpop.f32.mrf.mxu0 }
 0x1e2   : > { %v2413_v3 = vmul.f32 %v5050_v21, %v2304_v63  ;;  %v5069_v56 = vpop.permute.xlu0 %648  ;;  %v5723_v63 = vld [vmem:[#allocation61_spill] sm:$0xff] }
 0x1e3   : > { %v3560_v50 = vpop.f32.mrf.mxu0  ;;  %v1087_v15 = vsel %vm1062_vm4, %v1058_v55, %v5723_v63  ;;  %v5729_v55 = vld [vmem:[#allocation52_spill] sm:$0xff] }
 0x1e4   : > { %v2445_v28 = vadd.f32 %v5064_v54, %v2413_v3  ;;  %v1116_v50 = vsel %vm1091_vm6, %v1087_v15, %v4980_v33 }
 0x1e5   : > { %v5077_v8 = vpop.permute.xlu1 %541  ;;  %v2307_v59 = vpop.f32.mrf.mxu0  ;;  %v1145_v37 = vsel %vm1120_vm7, %v1116_v50, %v5011_v40 }
 0x1e6   : > { %v2470_v44 = vmax.f32 %v2445_v28, 0.0  ;;  %v2414_v4 = vmul.f32 %v5050_v21, %v2307_v59  ;;  %v972_v19 = vpop.permute.xlu0 %971 }
 0x1e7   : > { %v5082_v61 = vsel %vm1236_vm11, %v1219_v32, %v972_v19  ;;  %v3561_v47 = vpop.f32.mrf.mxu0  ;;  %v5724_v19 = vld [vmem:[#allocation37_spill] sm:$0xff] }
 0x1e8   : > { %v2520_v26 = vcombine.high %v2470_v44, %v2470_v44  ;;  %v2527_v12 = vrot.slane %v2470_v44, %v4400_v49  ;;  %v2446_v45 = vadd.f32 %v5064_v54, %v2414_v4  ;;  %v5088_v62 = vrot.slane %v5082_v61, %v4400_v49  ;;  %v3654_v4 = vld [vmem:[%s3721_s20 + $0x60] sm:$0xff] }
 0x1e9   : > { %v5090_v60 = vpop.permute.xlu1 %735 }
 0x1ea   : > { %v2534_v9 = vrot.slane %v2520_v26, %v4400_v49  ;;  %v2535_v53 = vcombine.high %v2527_v12, %v2527_v12  ;;  %v2471_v13 = vmax.f32 %v2446_v45, 0.0  ;;  %v714_v52 = vpop.permute.xlu0 %713  ;;  %v1909_v30 = vcombine.low %v1474_v16, %v5088_v62  ;;  %v5725_v26 = vld [vmem:[#allocation53_spill] sm:$0xff] }
 0x1ec   : > { %v2536_v39 = vcombine.high %v2534_v9, %v2534_v9  ;;  %v2936_v29 = vcombine.low %v2527_v12, %v2535_v53  ;;  %v2537_v10 = vcombine.high %v2471_v13, %v2471_v13  ;;  %v2544_v46 = vrot.slane %v2471_v13, %v4400_v49  ;;  %v3655_v13 = vld [vmem:[%s3721_s20 + $0xb8] sm:$0xff] }
 0x1ed   : > { %v1923_v17 = vrot.slane %v1909_v30, %v4400_v49  ;;  %v5098_v2 = vpop.permute.xlu1 %628  ;;  %v5726_v30 = vld [vmem:[#allocation42_spill] sm:$0xff] }
 0x1ee   : > { %v2937_v7 = vcombine.low %v2534_v9, %v2536_v39  ;;  %v5101_v5 = vrot.slane %v2537_v10, %v4400_v49  ;;  %v2552_v6 = vcombine.high %v2544_v46, %v2544_v46  ;;  %v911_v23 = vpop.permute.xlu0 %910  ;;  %v2944_v24 = vrot.slane %v2936_v29, %v4400_v49  ;;  %v5727_v10 = vld [vmem:[#allocation58_spill] sm:$0xff] }
 0x1ef   : > { %v1924_v18 = vcombine.low %v1916_v22, %v1923_v17  ;;  %v1057_v39 = vsel %vm1033_vm5, %v3655_v13, %v5726_v30 }
 0x1f0   : > { %v2951_v11 = vrot.slane %v2937_v7, %v4400_v49  ;;  %v2953_v43 = vcombine.low %v2544_v46, %v2552_v6  ;;  %v2967_v36 = vrot.slane %v5101_v5, %v4400_v49  ;;  %v1086_v46 = vsel %vm1062_vm4, %v1057_v39, %v5727_v10  ;;  %v5728_v6 = vld [vmem:[#allocation36_spill] sm:$0xff] }
 0x1f1   : > { %v822_v3 = vpop.permute.xlu1 %821  ;;  %v2200_v14 = vpack.c.bf16 %v1924_v18, %v5055_v35  ;;  %v1174_v35 = vsel %vm1149_vm8, %v1145_v37, %v5035_v0  ;;  %v1046_v0 = vsel %vm1033_vm5, %v3654_v4, %v5724_v19  ;;  %v1475_v18 = vcombine.high %v5082_v61, %v5082_v61 }
 0x1f2   : > { %v2952_v25 = vcombine.low %v2944_v24, %v2951_v11  ;;  %v2960_v28 = vrot.slane %v2953_v43, %v4400_v49  ;;  %v800_v57 = vpop.permute.xlu0 %799  ;;  %v1203_v59 = vsel %vm1178_vm9, %v1174_v35, %v5059_v1  ;;  %v1075_v12 = vsel %vm1062_vm4, %v1046_v0, %v5725_v26 }
 0x1f3   : > { %3575 = vmatmul.mubr.msk.bf16.gmra.mxu0 %vm2224_vm12, %v2200_v14  ;;  %v1232_v40 = vsel %vm1207_vm10, %v1203_v59, %v911_v23  ;;  %v1104_v45 = vsel %vm1091_vm6, %v1075_v12, %v5026_v58  ;;  %v1115_v23 = vsel %vm1091_vm6, %v1086_v46, %v5041_v42  ;;  %v1672_v61 = vcombine.high %v4992_v41, %v4992_v41 }
 0x1f4   : > { %3427 = vst.msk [vmem:[%s5113_s14] sm:$0xff] %vm3426_vm13, %v2952_v25  ;;  %v2968_v33 = vcombine.low %v2960_v28, %v2967_v36  ;;  %3578 = vmatprep.mubr.msk.bf16.mxu0 %vm3680_vm3, %v5677_v31  ;;  %v1133_v16 = vsel %vm1120_vm7, %v1104_v45, %v5043_v27  ;;  %v3656_v27 = vld [vmem:[%s3721_s20 + $0x68] sm:$0xff]  ;;  %v1144_v11 = vsel %vm1120_vm7, %v1115_v23, %v5069_v56 }
 0x1f5   : > { %v716_v32 = vpop.permute.xlu1 %715  ;;  %v1162_v53 = vsel %vm1149_vm8, %v1133_v16, %v714_v52  ;;  %v1047_v52 = vsel %vm1033_vm5, %v3656_v27, %v5728_v6  ;;  %v1173_v15 = vsel %vm1149_vm8, %v1144_v11, %v5090_v60 }
 0x1f6   : > { %3429 = vst.msk [vmem:[%s5113_s14 + $0x8] sm:$0x3f] %vm3428_vm14, %v2968_v33  ;;  %v998_v44 = vpop.permute.xlu0 %997  ;;  %v1191_v29 = vsel %vm1178_vm9, %v1162_v53, %v800_v57  ;;  %v1076_v24 = vsel %vm1062_vm4, %v1047_v52, %v5729_v55  ;;  %v1202_v14 = vsel %vm1178_vm9, %v1173_v15, %v822_v3  ;;  %v1489_v57 = vrot.slane %v1475_v18, %v4400_v49 }
 0x1f7   : > { %v1261_v47 = vsel %vm1236_vm11, %v1232_v40, %v998_v44  ;;  %v1105_v63 = vsel %vm1091_vm6, %v1076_v24, %v5077_v8  ;;  %v1490_v8 = vcombine.high %v5088_v62, %v5088_v62  ;;  %v2553_v33 = vcombine.high %v5101_v5, %v5101_v5 }
 0x1f8   : > { %v1689_v1 = vcombine.high %v1261_v47, %v1261_v47  ;;  %v1696_v22 = vrot.slane %v1261_v47, %v4400_v49  ;;  %v1134_v41 = vsel %vm1120_vm7, %v1105_v63, %v5098_v2 }
 0x1f9   : > { %v909_v38 = vpop.permute.xlu1 %908  ;;  %v1163_v0 = vsel %vm1149_vm8, %v1134_v41, %v716_v32 }
 0x1fa   : > { %v887_v9 = vpop.permute.xlu0 %886  ;;  %v1703_v58 = vrot.slane %v1689_v1, %v4400_v49  ;;  %v1704_v50 = vcombine.high %v1696_v22, %v1696_v22  ;;  %v1231_v60 = vsel %vm1207_vm10, %v1202_v14, %v909_v38 }
 0x1fb   : > { %v1220_v17 = vsel %vm1207_vm10, %v1191_v29, %v887_v9 }
 0x1fc   : > { %v1705_v25 = vcombine.high %v1703_v58, %v1703_v58  ;;  %v2112_v47 = vcombine.low %v1696_v22, %v1704_v50 }
 0x1fd   : > { %v974_v7 = vpop.permute.xlu1 %973 }
 0x1fe   : > { %v1249_v20 = vsel %vm1236_vm11, %v1220_v17, %v974_v7  ;;  %v802_v48 = vpop.permute.xlu0 %801  ;;  %v2113_v26 = vcombine.low %v1703_v58, %v1705_v25 }
 0x1ff   : > { %v2312_v43 = vpop.f32.mrf.mxu0  ;;  %v1491_v28 = vcombine.high %v1249_v20, %v1249_v20  ;;  %v1498_v3 = vrot.slane %v1249_v20, %v4400_v49  ;;  %v1192_v13 = vsel %vm1178_vm9, %v1163_v0, %v802_v48  ;;  %v2120_v48 = vrot.slane %v2112_v47, %v4400_v49 }
 0x200   : > { %v2415_v42 = vmul.f32 %v5050_v21, %v2312_v43  ;;  %v2127_v22 = vrot.slane %v2113_v26, %v4400_v49 }
 0x201   : > { %v5175_v36 = vpop.permute.xlu1 %567  ;;  %v3564_v56 = vpop.f32.mrf.mxu0  ;;  %v1505_v2 = vrot.slane %v1491_v28, %v4400_v49  ;;  %v1506_v53 = vcombine.high %v1498_v3, %v1498_v3 }
 0x202   : > { %v2447_v37 = vadd.f32 %v5064_v54, %v2415_v42  ;;  %v996_v35 = vpop.permute.xlu0 %995  ;;  %v2128_v28 = vcombine.low %v2120_v48, %v2127_v22  ;;  %v5730_v22 = vld [vmem:[#allocation47_spill] sm:$0xff]  ;;  %v5732_v48 = vld [vmem:[#allocation38_spill] sm:$0xff] }
 0x203   : > { %v1260_v59 = vsel %vm1236_vm11, %v1231_v60, %v996_v35  ;;  %v2315_v40 = vpop.f32.mrf.mxu0  ;;  %v1507_v58 = vcombine.high %v1505_v2, %v1505_v2  ;;  %v1926_v55 = vcombine.low %v1498_v3, %v1506_v53 }
 0x204   : > { %v2472_v44 = vmax.f32 %v2447_v37, 0.0  ;;  %v1673_v4 = vcombine.high %v1260_v59, %v1260_v59  ;;  %v1680_v62 = vrot.slane %v1260_v59, %v4400_v49  ;;  %v2416_v19 = vmul.f32 %v5050_v21, %v2315_v40 }
 0x205   : > { %v5192_v12 = vpop.permute.xlu1 %654  ;;  %v3565_v45 = vpop.f32.mrf.mxu0  ;;  %v1942_v56 = vcombine.low %v1505_v2, %v1507_v58 }
 0x206   : > { %v2554_v1 = vcombine.high %v2472_v44, %v2472_v44  ;;  %v2561_v5 = vrot.slane %v2472_v44, %v4400_v49  ;;  %v1687_v38 = vrot.slane %v1673_v4, %v4400_v49  ;;  %v1688_v16 = vcombine.high %v1680_v62, %v1680_v62  ;;  %v889_v9 = vpop.permute.xlu0 %888 }
 0x207   : > { %v2095_v30 = vcombine.low %v1672_v61, %v1680_v62  ;;  %v2448_v32 = vadd.f32 %v5064_v54, %v2416_v19  ;;  %v1221_v18 = vsel %vm1207_vm10, %v1192_v13, %v889_v9  ;;  %v1925_v61 = vcombine.low %v1490_v8, %v1489_v57 }
 0x208   : > { %v2568_v39 = vrot.slane %v2554_v1, %v4400_v49  ;;  %v2569_v29 = vcombine.high %v2561_v5, %v2561_v5  ;;  %v2969_v10 = vcombine.low %v2553_v33, %v2561_v5  ;;  %v2096_v46 = vcombine.low %v1688_v16, %v1687_v38 }
 0x209   : > { %v2103_v17 = vrot.slane %v2095_v30, %v4400_v49  ;;  %v2473_v7 = vmax.f32 %v2448_v32, 0.0  ;;  %v5201_v27 = vpop.permute.xlu1 %543  ;;  %v1940_v33 = vrot.slane %v1926_v55, %v4400_v49  ;;  %v1933_v44 = vrot.slane %v1925_v61, %v4400_v49 }
 0x20a   : > { %v2970_v6 = vcombine.low %v2569_v29, %v2568_v39  ;;  %v2110_v52 = vrot.slane %v2096_v46, %v4400_v49  ;;  %v2570_v23 = vcombine.high %v2568_v39, %v2568_v39  ;;  %v976_v20 = vpop.permute.xlu0 %975  ;;  %v2977_v43 = vrot.slane %v2969_v10, %v4400_v49  ;;  %v3657_v46 = vld [vmem:[%s3721_s20 + $0xd0] sm:$0xff] }
 0x20b   : > { %v2578_v24 = vrot.slane %v2473_v7, %v4400_v49  ;;  %v5208_v11 = vsel %vm1236_vm11, %v1221_v18, %v976_v20  ;;  %v1950_v4 = vrot.slane %v1942_v56, %v4400_v49  ;;  %v1941_v0 = vcombine.low %v1933_v44, %v1940_v33 }
 0x20c   : > { %v2984_v63 = vrot.slane %v2970_v6, %v4400_v49  ;;  %v2111_v15 = vcombine.low %v2103_v17, %v2110_v52  ;;  %v1515_v42 = vrot.slane %v5208_v11, %v4400_v49  ;;  %v2571_v30 = vcombine.high %v2473_v7, %v2473_v7  ;;  %v5731_v6 = vld [vmem:[#allocation62_spill] sm:$0xff] }
 0x20d   : > { %v2586_v14 = vcombine.high %v2578_v24, %v2578_v24  ;;  %v2986_v50 = vcombine.low %v2570_v23, %v2578_v24  ;;  %v742_v25 = vpop.permute.xlu1 %741  ;;  %v1060_v58 = vsel %vm1033_vm5, %v3657_v46, %v5730_v22  ;;  %v1049_v55 = vsel %vm1033_vm5, %v4703_v34, %v5732_v48  ;;  %v5735_v34 = vld [vmem:[#allocation46_spill] sm:$0xff] }
 0x20e   : > { %v2985_v60 = vcombine.low %v2977_v43, %v2984_v63  ;;  %v1523_v37 = vcombine.high %v1515_v42, %v1515_v42  ;;  %v5214_v35 = vpop.permute.xlu0 %565  ;;  %v2206_v57 = vpack.c.bf16 %v2128_v28, %v2111_v15  ;;  %v2585_v29 = vrot.slane %v2571_v30, %v4400_v49  ;;  %v3658_v15 = vld [vmem:[%s3721_s20 + $0x70] sm:$0xff] }
 0x20f   : > { %v2993_v41 = vrot.slane %v2986_v50, %v4400_v49  ;;  %v3000_v3 = vrot.slane %v2586_v14, %v4400_v49  ;;  %v1089_v52 = vsel %vm1062_vm4, %v1060_v58, %v5731_v6  ;;  %v1508_v24 = vcombine.high %v5208_v11, %v5208_v11  ;;  %v3659_v14 = vld [vmem:[%s3721_s20 + $0xc8] sm:$0xff]  ;;  %v5734_v50 = vld [vmem:[#allocation44_spill] sm:$0xff] }
 0x210   : > { %3430 = vst.msk [vmem:[%s5113_s14 + $0x10] sm:$0xff] %vm3426_vm13, %v2985_v60  ;;  %v1943_v59 = vcombine.low %v1515_v42, %v1523_v37  ;;  %3599 = vmatmul.mubr.msk.bf16.gmra.mxu1 %vm2224_vm12, %v2206_v57  ;;  %v2587_v23 = vcombine.high %v2585_v29, %v2585_v29  ;;  %v1118_v7 = vsel %vm1091_vm6, %v1089_v52, %v5175_v36  ;;  %v5733_v42 = vld [vmem:[#allocation39_spill] sm:$0xff] }
 0x211   : > { %v3001_v8 = vcombine.low %v2993_v41, %v3000_v3  ;;  %v631_v40 = vpop.permute.xlu1 %630  ;;  %3602 = vmatprep.mubr.msk.bf16.mxu1 %vm3680_vm3, %v5677_v31  ;;  %v1147_v20 = vsel %vm1120_vm7, %v1118_v7, %v5192_v12  ;;  %v1048_v61 = vsel %vm1033_vm5, %v3658_v15, %v5733_v42  ;;  %v1059_v36 = vsel %vm1033_vm5, %v3659_v14, %v5734_v50  ;;  %v5737_v37 = vld [vmem:[#allocation55_spill] sm:$0xff] }
 0x212   : > { %v1957_v62 = vrot.slane %v1943_v59, %v4400_v49  ;;  %v484_v19 = vpop.permute.xlu0 %483  ;;  %v1176_v43 = vsel %vm1149_vm8, %v1147_v20, %v742_v25  ;;  %v5262_v28 = vcombine.low %v2585_v29, %v2587_v23  ;;  %v1061_v11 = vsel %vm1033_vm5, %v4739_v51, %v5735_v34  ;;  %v5736_v25 = vld [vmem:[#allocation54_spill] sm:$0xff]  ;;  %v5738_v59 = vld [vmem:[#allocation60_spill] sm:$0xff] }
 0x213   : > { %3431 = vst.msk [vmem:[%s5113_s14 + $0x18] sm:$0x3f] %vm3428_vm14, %v3001_v8  ;;  %v1078_v60 = vsel %vm1062_vm4, %v1049_v55, %v5736_v25  ;;  %v1077_v41 = vsel %vm1062_vm4, %v1048_v61, %v5737_v37  ;;  %v1088_v57 = vsel %vm1062_vm4, %v1059_v36, %v5738_v59  ;;  %v5282_v51 = vrot.slane %v1508_v24, %v4400_v49 }
 0x214   : > { %v1958_v47 = vcombine.low %v1950_v4, %v1957_v62  ;;  %v1106_v8 = vsel %vm1091_vm6, %v1077_v41, %v5201_v27  ;;  %v1117_v62 = vsel %vm1091_vm6, %v1088_v57, %v5214_v35  ;;  %v3010_v27 = vrot.slane %v5262_v28, %v4400_v49 }
 0x215   : > { %v828_v26 = vpop.permute.xlu1 %827 }
 0x216   : > { %v653_v2 = vpop.permute.xlu0 %652  ;;  %v2201_v45 = vpack.c.bf16 %v1958_v47, %v1941_v0  ;;  %v1205_v12 = vsel %vm1178_vm9, %v1176_v43, %v828_v26  ;;  %v1135_v0 = vsel %vm1120_vm7, %v1106_v8, %v631_v40  ;;  %v1090_v47 = vsel %vm1062_vm4, %v1061_v11, %v484_v19 }
 0x218   : > { %3579 = vmatmul.mubr.msk.bf16.gmra.mxu0 %vm2224_vm12, %v2201_v45 }
 0x219   : > { %v570_v1 = vpop.permute.xlu1 %569  ;;  %3582 = vmatprep.mubr.msk.bf16.mxu0 %vm3680_vm3, %v5677_v31 }
 0x21a   : > { %v546_v5 = vpop.permute.xlu0 %545  ;;  %v1119_v30 = vsel %vm1091_vm6, %v1090_v47, %v570_v1 }
 0x21b   : > { %v1107_v35 = vsel %vm1091_vm6, %v1078_v60, %v546_v5 }
 0x21d   : > { %v740_v38 = vpop.permute.xlu1 %739 }
 0x21e   : > { %v718_v16 = vpop.permute.xlu0 %717 }
 0x21f   : > { %v1164_v6 = vsel %vm1149_vm8, %v1135_v0, %v718_v16 }
 0x221   : > { %v633_v9 = vpop.permute.xlu1 %632 }
 0x222   : > { %v915_v53 = vpop.permute.xlu0 %914  ;;  %v1136_v7 = vsel %vm1120_vm7, %v1107_v35, %v633_v9 }
 0x223   : > { %v1234_v3 = vsel %vm1207_vm10, %v1205_v12, %v915_v53  ;;  %v1146_v53 = vsel %vm1120_vm7, %v1117_v62, %v653_v2 }
 0x224   : > { %v1175_v40 = vsel %vm1149_vm8, %v1146_v53, %v740_v38 }
 0x225   : > { %v5232_v13 = vpop.permute.xlu1 %803 }
 0x226   : > { %v5234_v32 = vpop.permute.xlu0 %656  ;;  %v1193_v9 = vsel %vm1178_vm9, %v1164_v6, %v5232_v13 }
 0x227   : > { %v1148_v61 = vsel %vm1120_vm7, %v1119_v30, %v5234_v32 }
 0x229   : > { %v1002_v39 = vpop.permute.xlu1 %1001 }
 0x22a   : > { %v826_v10 = vpop.permute.xlu0 %825  ;;  %v1263_v44 = vsel %vm1236_vm11, %v1234_v3, %v1002_v39 }
 0x22b   : > { %v1722_v19 = vcombine.high %v1263_v44, %v1263_v44  ;;  %v1204_v52 = vsel %vm1178_vm9, %v1175_v40, %v826_v10  ;;  %v5305_v20 = vrot.slane %v1263_v44, %v4400_v49 }
 0x22d   : > { %v5240_v17 = vpop.permute.xlu1 %743  ;;  %v1737_v11 = vcombine.high %v5305_v20, %v5305_v20 }
 0x22e   : > { %v5244_v18 = vpop.permute.xlu0 %719  ;;  %v1177_v13 = vsel %vm1149_vm8, %v1148_v61, %v5240_v17 }
 0x22f   : > { %v1165_v53 = vsel %vm1149_vm8, %v1136_v7, %v5244_v18 }
 0x231   : > { %v913_v63 = vpop.permute.xlu1 %912 }
 0x232   : > { %v5265_v56 = vpop.permute.xlu0 %890  ;;  %v1233_v5 = vsel %vm1207_vm10, %v1204_v52, %v913_v63  ;;  %v5317_v63 = vrot.slane %v1722_v19, %v4400_v49 }
 0x233   : > { %v2320_v33 = vpop.f32.mrf.mxu0  ;;  %v1222_v59 = vsel %vm1207_vm10, %v1193_v9, %v5265_v56 }
 0x234   : > { %v2417_v4 = vmul.f32 %v5050_v21, %v2320_v33  ;;  %v1738_v52 = vcombine.high %v5317_v63, %v5317_v63 }
 0x235   : > { %v5288_v26 = vpop.permute.xlu1 %829  ;;  %v3568_v45 = vpop.f32.mrf.mxu0 }
 0x236   : > { %v2449_v39 = vadd.f32 %v5064_v54, %v2417_v4  ;;  %v2360_v29 = vpop.f32.mrf.mxu1  ;;  %v5295_v46 = vpop.permute.xlu0 %805  ;;  %v2146_v45 = vcombine.low %v1737_v11, %v5317_v63  ;;  %v1206_v18 = vsel %vm1178_vm9, %v1177_v13, %v5288_v26 }
 0x237   : > { %v2427_v22 = vmul.f32 %v5050_v21, %v2360_v29  ;;  %v2323_v58 = vpop.f32.mrf.mxu0 }
 0x238   : > { %v2474_v2 = vmax.f32 %v2449_v39, 0.0  ;;  %v2418_v1 = vmul.f32 %v5050_v21, %v2323_v58  ;;  %v3588_v23 = vpop.f32.mrf.mxu1  ;;  %v2154_v9 = vrot.slane %v2146_v45, %v4400_v49 }
 0x239   : > { %v2459_v38 = vadd.f32 %v5064_v54, %v2427_v22  ;;  %v1000_v48 = vpop.permute.xlu1 %999  ;;  %v3569_v55 = vpop.f32.mrf.mxu0 }
 0x23a   : > { %v2588_v24 = vcombine.high %v2474_v2, %v2474_v2  ;;  %v2595_v16 = vrot.slane %v2474_v2, %v4400_v49  ;;  %v2450_v10 = vadd.f32 %v5064_v54, %v2418_v1  ;;  %v1262_v43 = vsel %vm1236_vm11, %v1233_v5, %v1000_v48  ;;  %v2363_v15 = vpop.f32.mrf.mxu1  ;;  %v978_v42 = vpop.permute.xlu0 %977 }
 0x23b   : > { %v2484_v14 = vmax.f32 %v2459_v38, 0.0  ;;  %v1713_v12 = vrot.slane %v1262_v43, %v4400_v49  ;;  %v1706_v33 = vcombine.high %v1262_v43, %v1262_v43  ;;  %v2428_v44 = vmul.f32 %v5050_v21, %v2363_v15 }
 0x23c   : > { %v2602_v50 = vrot.slane %v2588_v24, %v4400_v49  ;;  %v2603_v36 = vcombine.high %v2595_v16, %v2595_v16  ;;  %v5320_v28 = vmax.f32 %v2450_v10, 0.0  ;;  %v3589_v34 = vpop.f32.mrf.mxu1  ;;  %v1251_v0 = vsel %vm1236_vm11, %v1222_v59, %v978_v42 }
 0x23d   : > { %v2758_v25 = vcombine.high %v2484_v14, %v2484_v14  ;;  %v2765_v32 = vrot.slane %v2484_v14, %v4400_v49  ;;  %v917_v60 = vpop.permute.xlu1 %916  ;;  %v1721_v62 = vcombine.high %v1713_v12, %v1713_v12  ;;  %v1720_v40 = vrot.slane %v1706_v33, %v4400_v49 }
 0x23e   : > { %v2604_v37 = vcombine.high %v2602_v50, %v2602_v50  ;;  %v3003_v41 = vcombine.low %v2595_v16, %v2603_v36  ;;  %v5330_v3 = vrot.slane %v5320_v28, %v4400_v49  ;;  %v893_v47 = vpop.permute.xlu0 %892  ;;  %v2460_v22 = vadd.f32 %v5064_v54, %v2428_v44 }
 0x23f   : > { %v2772_v57 = vrot.slane %v2758_v25, %v4400_v49  ;;  %v2773_v8 = vcombine.high %v2765_v32, %v2765_v32  ;;  %v1524_v58 = vcombine.high %v1251_v0, %v1251_v0  ;;  %v2129_v2 = vcombine.low %v1713_v12, %v1721_v62 }
 0x240   : > { %v3017_v17 = vrot.slane %v3003_v41, %v4400_v49  ;;  %v3019_v4 = vcombine.low %v2602_v50, %v2604_v37  ;;  %v3033_v35 = vrot.slane %v5330_v3, %v4400_v49  ;;  %v1531_v1 = vrot.slane %v1251_v0, %v4400_v49 }
 0x241   : > { %v2774_v30 = vcombine.high %v2772_v57, %v2772_v57  ;;  %v3200_v56 = vcombine.low %v2765_v32, %v2773_v8  ;;  %v1004_v6 = vpop.permute.xlu1 %1003  ;;  %v2485_v5 = vmax.f32 %v2460_v22, 0.0  ;;  %v1235_v38 = vsel %vm1207_vm10, %v1206_v18, %v917_v60 }
 0x242   : > { %v3018_v39 = vcombine.low %v3010_v27, %v3017_v17  ;;  %v3026_v29 = vrot.slane %v3019_v4, %v4400_v49  ;;  %v1194_v48 = vsel %vm1178_vm9, %v1165_v53, %v5295_v46  ;;  %v2130_v55 = vcombine.low %v1720_v40, %v5305_v20  ;;  %v980_v16 = vpop.permute.xlu0 %979 }
 0x243   : > { %v3201_v19 = vcombine.low %v2772_v57, %v2774_v30  ;;  %v3208_v23 = vrot.slane %v3200_v56, %v4400_v49  ;;  %v1538_v26 = vrot.slane %v1524_v58, %v4400_v49  ;;  %v1264_v24 = vsel %vm1236_vm11, %v1235_v38, %v1004_v6 }
 0x244   : > { %3432 = vst.msk [vmem:[%s5113_s14 + $0x20] sm:$0xff] %vm3426_vm13, %v3018_v39  ;;  %v3034_v27 = vcombine.low %v3026_v29, %v3033_v35  ;;  %v2775_v43 = vcombine.high %v2485_v5, %v2485_v5  ;;  %v2782_v15 = vrot.slane %v2485_v5, %v4400_v49  ;;  %v1539_v42 = vcombine.high %v1531_v1, %v1531_v1 }
 0x245   : > { %v3215_v7 = vrot.slane %v3201_v19, %v4400_v49  ;;  %v1223_v61 = vsel %vm1207_vm10, %v1194_v48, %v893_v47  ;;  %v1739_v63 = vcombine.high %v1264_v24, %v1264_v24  ;;  %v1746_v46 = vrot.slane %v1264_v24, %v4400_v49 }
 0x246   : > { %3433 = vst.msk [vmem:[%s5113_s14 + $0x28] sm:$0x3f] %vm3428_vm14, %v3034_v27  ;;  %v2137_v20 = vrot.slane %v2129_v2, %v4400_v49  ;;  %v5371_v14 = vrot.slane %v2775_v43, %v4400_v49  ;;  %v2790_v50 = vcombine.high %v2782_v15, %v2782_v15  ;;  %v1252_v36 = vsel %vm1236_vm11, %v1223_v61, %v980_v16 }
 0x247   : > { %v3216_v10 = vcombine.low %v3208_v23, %v3215_v7  ;;  %v2144_v12 = vrot.slane %v2130_v55, %v4400_v49  ;;  %v1959_v34 = vcombine.low %v5282_v51, %v1531_v1  ;;  %v2147_v11 = vcombine.low %v1738_v52, %v1746_v46 }
 0x248   : > { %v1541_v13 = vcombine.high %v1252_v36, %v1252_v36  ;;  %v3217_v25 = vcombine.low %v2782_v15, %v2790_v50  ;;  %v1960_v32 = vcombine.low %v1539_v42, %v1538_v26  ;;  %v1540_v60 = vcombine.high %v1538_v26, %v1538_v26 }
 0x249   : > { %3444 = vst.msk [vmem:[%s5113_s14 + $0x80] sm:$0xff] %vm3426_vm13, %v3216_v10  ;;  %v1548_v37 = vrot.slane %v1252_v36, %v4400_v49  ;;  %v1753_v41 = vrot.slane %v1739_v63, %v4400_v49  ;;  %v1754_v33 = vcombine.high %v1746_v46, %v1746_v46  ;;  %v2161_v59 = vrot.slane %v2147_v11, %v4400_v49 }
 0x24a   : > { %v1555_v57 = vrot.slane %v1541_v13, %v4400_v49  ;;  %v3224_v8 = vrot.slane %v3217_v25, %v4400_v49  ;;  %v3231_v51 = vrot.slane %v5371_v14, %v4400_v49  ;;  %v2145_v4 = vcombine.low %v2137_v20, %v2144_v12 }
 0x24b   : > { %v1556_v44 = vcombine.high %v1548_v37, %v1548_v37  ;;  %v1976_v17 = vcombine.low %v1540_v60, %v1548_v37  ;;  %v2162_v62 = vcombine.low %v2154_v9, %v2161_v59  ;;  %v1974_v47 = vrot.slane %v1960_v32, %v4400_v49 }
 0x24c   : > { %v3232_v0 = vcombine.low %v3224_v8, %v3231_v51  ;;  %v2163_v53 = vcombine.low %v1754_v33, %v1753_v41  ;;  %v1967_v56 = vrot.slane %v1959_v34, %v4400_v49  ;;  %v2605_v6 = vcombine.high %v5320_v28, %v5320_v28 }
 0x24d   : > { %v1977_v45 = vcombine.low %v1556_v44, %v1555_v57  ;;  %v2207_v30 = vpack.c.bf16 %v2162_v62, %v2145_v4  ;;  %v1984_v39 = vrot.slane %v1976_v17, %v4400_v49  ;;  %v2620_v23 = vcombine.high %v5330_v3, %v5330_v3 }
 0x24e   : > { %3445 = vst.msk [vmem:[%s5113_s14 + $0x88] sm:$0x3f] %vm3428_vm14, %v3232_v0  ;;  %v1975_v35 = vcombine.low %v1967_v56, %v1974_v47  ;;  %v2170_v19 = vrot.slane %v2163_v53, %v4400_v49  ;;  %v2791_v24 = vcombine.high %v5371_v14, %v5371_v14 }
 0x24f   : > { %v1991_v29 = vrot.slane %v1977_v45, %v4400_v49  ;;  %3603 = vmatmul.mubr.msk.bf16.gmra.mxu1 %vm2224_vm12, %v2207_v30 }
 0x250   : > { %3606 = vmatprep.mubr.msk.bf16.mxu1 %vm3680_vm3, %v5677_v31  ;;  %v2208_v58 = vpack.c.bf16 %v2170_v19, %v2170_v19  ;;  %v2619_v31 = vrot.slane %v2605_v6, %v4400_v49 }
 0x251   : > { %v1992_v40 = vcombine.low %v1984_v39, %v1991_v29 }
 0x252   : > { %v3035_v3 = vcombine.low %v2620_v23, %v2619_v31  ;;  %v2621_v36 = vcombine.high %v2619_v31, %v2619_v31 }
 0x253   : > { %v2202_v22 = vpack.c.bf16 %v1992_v40, %v1975_v35 }
 0x254   : > { %v3043_v41 = vrot.slane %v3035_v3, %v4400_v49 }
 0x255   : > { %3583 = vmatmul.mubr.msk.bf16.gmra.mxu0 %vm2224_vm12, %v2202_v22 }
 0x257   : > { %3607 = vmatmul.mubr.msk.bf16.gmra.mxu1 %vm2224_vm12, %v2208_v58 }
 0x263   : > { %v2368_v52 = vpop.f32.mrf.mxu1 }
 0x264   : > { %v2429_v18 = vmul.f32 %v5050_v21, %v2368_v52 }
 0x265   : > { %v3592_v27 = vpop.f32.mrf.mxu1 }
 0x266   : > { %v2461_v2 = vadd.f32 %v5064_v54, %v2429_v18 }
 0x267   : > { %v2328_v1 = vpop.f32.mrf.mxu0  ;;  %v2371_v5 = vpop.f32.mrf.mxu1 }
 0x268   : > { %v2419_v7 = vmul.f32 %v5050_v21, %v2328_v1  ;;  %v2486_v38 = vmax.f32 %v2461_v2, 0.0  ;;  %v2430_v48 = vmul.f32 %v5050_v21, %v2371_v5 }
 0x269   : > { %v3572_v55 = vpop.f32.mrf.mxu0  ;;  %v3593_v26 = vpop.f32.mrf.mxu1 }
 0x26a   : > { %v2451_v28 = vadd.f32 %v5064_v54, %v2419_v7  ;;  %v2792_v16 = vcombine.high %v2486_v38, %v2486_v38  ;;  %v2799_v10 = vrot.slane %v2486_v38, %v4400_v49  ;;  %v2462_v43 = vadd.f32 %v5064_v54, %v2430_v48 }
 0x26b   : > { %v2331_v15 = vpop.f32.mrf.mxu0 }
 0x26c   : > { %v2476_v42 = vmax.f32 %v2451_v28, 0.0  ;;  %v2420_v9 = vmul.f32 %v5050_v21, %v2331_v15  ;;  %v2806_v61 = vrot.slane %v2792_v16, %v4400_v49  ;;  %v2807_v63 = vcombine.high %v2799_v10, %v2799_v10 }
 0x26d   : > { %v3233_v46 = vcombine.low %v2791_v24, %v2799_v10  ;;  %v2487_v20 = vmax.f32 %v2462_v43, 0.0  ;;  %v3573_v50 = vpop.f32.mrf.mxu0 }
 0x26e   : > { %v2622_v12 = vcombine.high %v2476_v42, %v2476_v42  ;;  %v2629_v14 = vrot.slane %v2476_v42, %v4400_v49  ;;  %v2452_v34 = vadd.f32 %v5064_v54, %v2420_v9  ;;  %v3234_v11 = vcombine.low %v2807_v63, %v2806_v61 }
 0x26f   : > { %v2808_v13 = vcombine.high %v2806_v61, %v2806_v61  ;;  %v2816_v37 = vrot.slane %v2487_v20, %v4400_v49  ;;  %v3241_v33 = vrot.slane %v3233_v46, %v4400_v49  ;;  %v2809_v2 = vcombine.high %v2487_v20, %v2487_v20 }
 0x270   : > { %v2636_v25 = vrot.slane %v2622_v12, %v4400_v49  ;;  %v2637_v32 = vcombine.high %v2629_v14, %v2629_v14  ;;  %v3036_v60 = vcombine.low %v2621_v36, %v2629_v14  ;;  %v3248_v59 = vrot.slane %v3234_v11, %v4400_v49 }
 0x271   : > { %v2477_v57 = vmax.f32 %v2452_v34, 0.0  ;;  %v2824_v17 = vcombine.high %v2816_v37, %v2816_v37  ;;  %v3250_v62 = vcombine.low %v2808_v13, %v2816_v37  ;;  %v2823_v31 = vrot.slane %v2809_v2, %v4400_v49 }
 0x272   : > { %v2638_v8 = vcombine.high %v2636_v25, %v2636_v25  ;;  %v3050_v51 = vrot.slane %v3036_v60, %v4400_v49  ;;  %v3052_v44 = vcombine.low %v2637_v32, %v2636_v25  ;;  %v3249_v4 = vcombine.low %v3241_v33, %v3248_v59 }
 0x273   : > { %v2639_v0 = vcombine.high %v2477_v57, %v2477_v57  ;;  %v3264_v30 = vrot.slane %v2824_v17, %v4400_v49  ;;  %v3257_v56 = vrot.slane %v3250_v62, %v4400_v49  ;;  %v2646_v39 = vrot.slane %v2477_v57, %v4400_v49 }
 0x274   : > { %v3051_v47 = vcombine.low %v3043_v41, %v3050_v51  ;;  %v3059_v45 = vrot.slane %v3052_v44, %v4400_v49  ;;  %v3066_v53 = vrot.slane %v2638_v8, %v4400_v49  ;;  %3446 = vst.msk [vmem:[%s5113_s14 + $0x90] sm:$0xff] %vm3426_vm13, %v3249_v4  ;;  %v2825_v48 = vcombine.high %v2823_v31, %v2823_v31 }
 0x275   : > { %v2653_v29 = vrot.slane %v2639_v0, %v4400_v49  ;;  %v3265_v40 = vcombine.low %v3257_v56, %v3264_v30  ;;  %v2654_v19 = vcombine.high %v2646_v39, %v2646_v39 }
 0x276   : > { %v3067_v35 = vcombine.low %v3059_v45, %v3066_v53  ;;  %3434 = vst.msk [vmem:[%s5113_s14 + $0x30] sm:$0xff] %vm3426_vm13, %v3051_v47  ;;  %v3266_v43 = vcombine.low %v2823_v31, %v2825_v48 }
 0x277   : > { %v2655_v22 = vcombine.high %v2653_v29, %v2653_v29  ;;  %3447 = vst.msk [vmem:[%s5113_s14 + $0x98] sm:$0x3f] %vm3428_vm14, %v3265_v40  ;;  %v3068_v58 = vcombine.low %v2646_v39, %v2654_v19 }
 0x278   : > { %3435 = vst.msk [vmem:[%s5113_s14 + $0x38] sm:$0x3f] %vm3428_vm14, %v3067_v35  ;;  %v3274_v46 = vrot.slane %v3266_v43, %v4400_v49 }
 0x279   : > { %v3069_v6 = vcombine.low %v2653_v29, %v2655_v22  ;;  %v3076_v52 = vrot.slane %v3068_v58, %v4400_v49 }
 0x27b   : > { %v3083_v18 = vrot.slane %v3069_v6, %v4400_v49 }
 0x27d   : > { %v3084_v27 = vcombine.low %v3076_v52, %v3083_v18 }
 0x27f   : > { %3436 = vst.msk [vmem:[%s5113_s14 + $0x40] sm:$0xff] %vm3426_vm13, %v3084_v27 }
 0x298   : > { %v2376_v1 = vpop.f32.mrf.mxu1 }
 0x299   : > { %v2431_v23 = vmul.f32 %v5050_v21, %v2376_v1 }
 0x29a   : > { %v3596_v7 = vpop.f32.mrf.mxu1 }
 0x29b   : > { %v2463_v5 = vadd.f32 %v5064_v54, %v2431_v23 }
 0x29c   : > { %v2379_v38 = vpop.f32.mrf.mxu1 }
 0x29d   : > { %v2488_v55 = vmax.f32 %v2463_v5, 0.0  ;;  %v2432_v28 = vmul.f32 %v5050_v21, %v2379_v38 }
 0x29e   : > { %v3597_v26 = vpop.f32.mrf.mxu1 }
 0x29f   : > { %v2826_v24 = vcombine.high %v2488_v55, %v2488_v55  ;;  %v2833_v16 = vrot.slane %v2488_v55, %v4400_v49  ;;  %v2464_v10 = vadd.f32 %v5064_v54, %v2432_v28 }
 0x2a1   : > { %v2840_v15 = vrot.slane %v2826_v24, %v4400_v49  ;;  %v2841_v3 = vcombine.high %v2833_v16, %v2833_v16  ;;  %v2489_v42 = vmax.f32 %v2464_v10, 0.0 }
 0x2a3   : > { %v2842_v9 = vcombine.high %v2840_v15, %v2840_v15  ;;  %v3267_v61 = vcombine.low %v2833_v16, %v2841_v3  ;;  %v2850_v63 = vrot.slane %v2489_v42, %v4400_v49  ;;  %v2843_v58 = vcombine.high %v2489_v42, %v2489_v42  ;;  %v5478_v16 = vld [vmem:[%s5564_s2] ss:$0 sm:$0xff] }
 0x2a5   : > { %v3281_v20 = vrot.slane %v3267_v61, %v4400_v49  ;;  %v3283_v50 = vcombine.low %v2840_v15, %v2842_v9  ;;  %v3297_v14 = vrot.slane %v2850_v63, %v4400_v49  ;;  %v2857_v18 = vrot.slane %v2843_v58, %v4400_v49  ;;  %v5486_v61 = vld [vmem:[%s5565_s3] ss:$0 sm:$0xff] }
 0x2a6   : > { %v2858_v27 = vcombine.high %v2850_v63, %v2850_v63 }
 0x2a7   : > { %v3282_v36 = vcombine.low %v3274_v46, %v3281_v20  ;;  %v3290_v12 = vrot.slane %v3283_v50, %v4400_v49  ;;  %v2859_v38 = vcombine.high %v2857_v18, %v2857_v18 }
 0x2a8   : > { %v3299_v5 = vcombine.low %v2858_v27, %v2857_v18 }
 0x2a9   : > { %3448 = vst.msk [vmem:[%s5113_s14 + $0xa0] sm:$0xff] %vm3426_vm13, %v3282_v36  ;;  %v3298_v34 = vcombine.low %v3290_v12, %v3297_v14 }
 0x2aa   : > { %v3307_v9 = vrot.slane %v3299_v5, %v4400_v49 }
 0x2ab   : > { %3449 = vst.msk [vmem:[%s5113_s14 + $0xa8] sm:$0x3f] %vm3428_vm14, %v3298_v34 }
 0x2b3   : > { %v2336_v11 = vpop.f32.mrf.mxu0 }
 0x2b4   : > { %v2421_v13 = vmul.f32 %v5050_v21, %v2336_v11 }
 0x2b5   : > { %v3576_v25 = vpop.f32.mrf.mxu0 }
 0x2b6   : > { %v2453_v32 = vadd.f32 %v5064_v54, %v2421_v13 }
 0x2b7   : > { %v2339_v60 = vpop.f32.mrf.mxu0 }
 0x2b8   : > { %v2478_v37 = vmax.f32 %v2453_v32, 0.0  ;;  %v2422_v41 = vmul.f32 %v5050_v21, %v2339_v60 }
 0x2b9   : > { %v3577_v33 = vpop.f32.mrf.mxu0 }
 0x2ba   : > { %v2656_v59 = vcombine.high %v2478_v37, %v2478_v37  ;;  %v2663_v57 = vrot.slane %v2478_v37, %v4400_v49  ;;  %v2454_v8 = vadd.f32 %v5064_v54, %v2422_v41 }
 0x2bc   : > { %v2670_v51 = vrot.slane %v2656_v59, %v4400_v49  ;;  %v2671_v44 = vcombine.high %v2663_v57, %v2663_v57  ;;  %v2479_v17 = vmax.f32 %v2454_v8, 0.0 }
 0x2be   : > { %v3085_v4 = vcombine.low %v2663_v57, %v2671_v44  ;;  %v2672_v62 = vcombine.high %v2670_v51, %v2670_v51  ;;  %v2673_v0 = vcombine.high %v2479_v17, %v2479_v17  ;;  %v2680_v47 = vrot.slane %v2479_v17, %v4400_v49 }
 0x2bf   : > { %v3099_v53 = vrot.slane %v2670_v51, %v4400_v49 }
 0x2c0   : > { %v3092_v45 = vrot.slane %v3085_v4, %v4400_v49  ;;  %v2687_v30 = vrot.slane %v2673_v0, %v4400_v49  ;;  %v2688_v56 = vcombine.high %v2680_v47, %v2680_v47  ;;  %v3101_v39 = vcombine.low %v2672_v62, %v2680_v47 }
 0x2c2   : > { %v3100_v29 = vcombine.low %v3092_v45, %v3099_v53  ;;  %v3102_v35 = vcombine.low %v2688_v56, %v2687_v30  ;;  %v3109_v40 = vrot.slane %v3101_v39, %v4400_v49  ;;  %v2689_v34 = vcombine.high %v2687_v30, %v2687_v30 }
 0x2c4   : > { %3437 = vst.msk [vmem:[%s5113_s14 + $0x48] sm:$0x3f] %vm3428_vm14, %v3100_v29  ;;  %v3116_v19 = vrot.slane %v3102_v35, %v4400_v49 }
 0x2c6   : > { %v3117_v22 = vcombine.low %v3109_v40, %v3116_v19 }
 0x2c8   : > { %3438 = vst.msk [vmem:[%s5113_s14 + $0x50] sm:$0xff] %vm3426_vm13, %v3117_v22 }
 0x2d0   : > { %v2384_v6 = vpop.f32.mrf.mxu1 }
 0x2d1   : > { %v2433_v52 = vmul.f32 %v5050_v21, %v2384_v6 }
 0x2d2   : > { %v3600_v2 = vpop.f32.mrf.mxu1 }
 0x2d3   : > { %v2465_v1 = vadd.f32 %v5064_v54, %v2433_v52 }
 0x2d4   : > { %v2387_v31 = vpop.f32.mrf.mxu1 }
 0x2d5   : > { %v2490_v23 = vmax.f32 %v2465_v1, 0.0  ;;  %v2434_v7 = vmul.f32 %v5050_v21, %v2387_v31 }
 0x2d6   : > { %v3601_v48 = vpop.f32.mrf.mxu1 }
 0x2d7   : > { %v2860_v28 = vcombine.high %v2490_v23, %v2490_v23  ;;  %v2867_v26 = vrot.slane %v2490_v23, %v4400_v49  ;;  %v2466_v24 = vadd.f32 %v5064_v54, %v2434_v7 }
 0x2d8   : > { %v2344_v55 = vpop.f32.mrf.mxu0 }
 0x2d9   : > { %v2423_v10 = vmul.f32 %v5478_v16, %v2344_v55  ;;  %v2874_v15 = vrot.slane %v2860_v28, %v4400_v49  ;;  %v2875_v21 = vcombine.high %v2867_v26, %v2867_v26  ;;  %v3300_v3 = vcombine.low %v2859_v38, %v2867_v26 }
 0x2da   : > { %v3580_v43 = vpop.f32.mrf.mxu0  ;;  %v2491_v42 = vmax.f32 %v2466_v24, 0.0 }
 0x2db   : > { %v2455_v54 = vadd.f32 %v5486_v61, %v2423_v10  ;;  %v2876_v46 = vcombine.high %v2874_v15, %v2874_v15  ;;  %v3314_v20 = vrot.slane %v3300_v3, %v4400_v49  ;;  %v3316_v50 = vcombine.low %v2875_v21, %v2874_v15 }
 0x2dc   : > { %v2347_v63 = vpop.f32.mrf.mxu0  ;;  %v2877_v36 = vcombine.high %v2491_v42, %v2491_v42  ;;  %v2884_v12 = vrot.slane %v2491_v42, %v4400_v49 }
 0x2dd   : > { %v2480_v14 = vmax.f32 %v2455_v54, 0.0  ;;  %v2424_v11 = vmul.f32 %v5478_v16, %v2347_v63  ;;  %v3315_v25 = vcombine.low %v3307_v9, %v3314_v20  ;;  %v3323_v32 = vrot.slane %v3316_v50, %v4400_v49 }
 0x2de   : > { %v3581_v13 = vpop.f32.mrf.mxu0  ;;  %v3330_v60 = vrot.slane %v2876_v46, %v4400_v49  ;;  %v2891_v37 = vrot.slane %v2877_v36, %v4400_v49  ;;  %v2892_v41 = vcombine.high %v2884_v12, %v2884_v12 }
 0x2df   : > { %v2690_v33 = vcombine.high %v2480_v14, %v2480_v14  ;;  %v2697_v59 = vrot.slane %v2480_v14, %v4400_v49  ;;  %v2456_v57 = vadd.f32 %v5486_v61, %v2424_v11  ;;  %3450 = vst.msk [vmem:[%s5113_s14 + $0xb0] sm:$0xff] %vm3426_vm13, %v3315_v25 }
 0x2e0   : > { %v3331_v8 = vcombine.low %v3323_v32, %v3330_v60  ;;  %v2893_v51 = vcombine.high %v2891_v37, %v2891_v37  ;;  %v3332_v44 = vcombine.low %v2884_v12, %v2892_v41 }
 0x2e1   : > { %v2704_v17 = vrot.slane %v2690_v33, %v4400_v49  ;;  %v2705_v4 = vcombine.high %v2697_v59, %v2697_v59  ;;  %v3118_v62 = vcombine.low %v2689_v34, %v2697_v59  ;;  %v2481_v47 = vmax.f32 %v2456_v57, 0.0 }
 0x2e2   : > { %3451 = vst.msk [vmem:[%s5113_s14 + $0xb8] sm:$0x3f] %vm3428_vm14, %v3331_v8  ;;  %v3333_v0 = vcombine.low %v2891_v37, %v2893_v51  ;;  %v3340_v56 = vrot.slane %v3332_v44, %v4400_v49 }
 0x2e3   : > { %v2706_v45 = vcombine.high %v2704_v17, %v2704_v17  ;;  %v3125_v53 = vrot.slane %v3118_v62, %v4400_v49  ;;  %v3132_v30 = vrot.slane %v2705_v4, %v4400_v49  ;;  %v2714_v29 = vrot.slane %v2481_v47, %v4400_v49 }
 0x2e4   : > { %v3347_v39 = vrot.slane %v3333_v0, %v4400_v49  ;;  %v2707_v27 = vcombine.high %v2481_v47, %v2481_v47 }
 0x2e5   : > { %v3133_v35 = vcombine.low %v3125_v53, %v3132_v30  ;;  %v3134_v19 = vcombine.low %v2704_v17, %v2706_v45  ;;  %v2722_v22 = vcombine.high %v2714_v29, %v2714_v29 }
 0x2e6   : > { %v3348_v40 = vcombine.low %v3340_v56, %v3347_v39  ;;  %v2721_v2 = vrot.slane %v2707_v27, %v4400_v49 }
 0x2e7   : > { %3439 = vst.msk [vmem:[%s5113_s14 + $0x58] sm:$0x3f] %vm3428_vm14, %v3133_v35  ;;  %v3135_v58 = vcombine.low %v2714_v29, %v2722_v22  ;;  %v3142_v6 = vrot.slane %v3134_v19, %v4400_v49 }
 0x2e8   : > { %3452 = vst.msk [vmem:[%s5113_s14 + $0xc0] sm:$0xff] %vm3426_vm13, %v3348_v40  ;;  %v2723_v7 = vcombine.high %v2721_v2, %v2721_v2 }
 0x2e9   : > { %v3149_v52 = vrot.slane %v3135_v58, %v4400_v49 }
 0x2ea   : > { %v3151_v10 = vcombine.low %v2721_v2, %v2723_v7 }
 0x2eb   : > { %v3150_v18 = vcombine.low %v3142_v6, %v3149_v52 }
 0x2ec   : > { %v3158_v11 = vrot.slane %v3151_v10, %v4400_v49 }
 0x2ed   : > { %3440 = vst.msk [vmem:[%s5113_s14 + $0x60] sm:$0xff] %vm3426_vm13, %v3150_v18 }
 0x30f   : > { %v2392_v1 = vpop.f32.mrf.mxu1 }
 0x310   : > { %v2435_v31 = vmul.f32 %v5478_v16, %v2392_v1 }
 0x311   : > { %v3604_v23 = vpop.f32.mrf.mxu1 }
 0x312   : > { %v2467_v5 = vadd.f32 %v5486_v61, %v2435_v31 }
 0x313   : > { %v2395_v38 = vpop.f32.mrf.mxu1 }
 0x314   : > { %v2492_v48 = vmax.f32 %v2467_v5, 0.0  ;;  %v2436_v28 = vmul.f32 %v5478_v16, %v2395_v38 }
 0x315   : > { %v2352_v55 = vpop.f32.mrf.mxu0  ;;  %v3605_v24 = vpop.f32.mrf.mxu1 }
 0x316   : > { %v2425_v26 = vmul.f32 %v5478_v16, %v2352_v55  ;;  %v2894_v43 = vcombine.high %v2492_v48, %v2492_v48  ;;  %v2901_v15 = vrot.slane %v2492_v48, %v4400_v49  ;;  %v2468_v3 = vadd.f32 %v5486_v61, %v2436_v28 }
 0x317   : > { %v3584_v21 = vpop.f32.mrf.mxu0  ;;  %v2400_v9 = vpop.f32.mrf.mxu1 }
 0x318   : > { %v2457_v42 = vadd.f32 %v5486_v61, %v2425_v26  ;;  %v2908_v54 = vrot.slane %v2894_v43, %v4400_v49  ;;  %v2909_v63 = vcombine.high %v2901_v15, %v2901_v15  ;;  %v2493_v46 = vmax.f32 %v2468_v3, 0.0 }
 0x319   : > { %v2355_v20 = vpop.f32.mrf.mxu0  ;;  %v2437_v50 = vmul.f32 %v5478_v16, %v2400_v9  ;;  %v3608_v14 = vpop.f32.mrf.mxu1 }
 0x31a   : > { %v2482_v36 = vmax.f32 %v2457_v42, 0.0  ;;  %v2426_v12 = vmul.f32 %v5478_v16, %v2355_v20  ;;  %v3349_v34 = vcombine.low %v2901_v15, %v2909_v63  ;;  %v2910_v13 = vcombine.high %v2908_v54, %v2908_v54 }
 0x31b   : > { %v2911_v25 = vcombine.high %v2493_v46, %v2493_v46  ;;  %v3585_v32 = vpop.f32.mrf.mxu0  ;;  %v2918_v41 = vrot.slane %v2493_v46, %v4400_v49  ;;  %v2403_v59 = vpop.f32.mrf.mxu1  ;;  %v3363_v16 = vrot.slane %v2908_v54, %v4400_v49  ;;  %v2469_v51 = vadd.f32 %v5486_v61, %v2437_v50 }
 0x31c   : > { %v2724_v60 = vcombine.high %v2482_v36, %v2482_v36  ;;  %v2731_v37 = vrot.slane %v2482_v36, %v4400_v49  ;;  %v2458_v33 = vadd.f32 %v5486_v61, %v2426_v12  ;;  %v3356_v57 = vrot.slane %v3349_v34, %v4400_v49 }
 0x31d   : > { %v2925_v8 = vrot.slane %v2911_v25, %v4400_v49  ;;  %v2926_v62 = vcombine.high %v2918_v41, %v2918_v41  ;;  %v3609_v0 = vpop.f32.mrf.mxu1  ;;  %v3365_v45 = vcombine.low %v2910_v13, %v2918_v41  ;;  %v2494_v30 = vmax.f32 %v2469_v51, 0.0 }
 0x31e   : > { %v2738_v44 = vrot.slane %v2724_v60, %v4400_v49  ;;  %v2739_v17 = vcombine.high %v2731_v37, %v2731_v37  ;;  %v3165_v4 = vrot.slane %v2731_v37, %v4400_v49  ;;  %v3364_v47 = vcombine.low %v3356_v57, %v3363_v16 }
 0x31f   : > { %v2483_v53 = vmax.f32 %v2458_v33, 0.0  ;;  %v3366_v39 = vcombine.low %v2926_v62, %v2925_v8  ;;  %v2927_v19 = vcombine.high %v2925_v8, %v2925_v8  ;;  %v3373_v22 = vrot.slane %v3365_v45, %v4400_v49 }
 0x320   : > { %v3166_v56 = vcombine.low %v3158_v11, %v3165_v4  ;;  %v2740_v29 = vcombine.high %v2738_v44, %v2738_v44  ;;  %3453 = vst.msk [vmem:[%s5113_s14 + $0xc8] sm:$0x3f] %vm3428_vm14, %v3364_v47  ;;  %v3167_v35 = vcombine.low %v2739_v17, %v2738_v44  ;;  %v2934_v6 = vrot.slane %v2494_v30, %v4400_v49 }
 0x321   : > { %v2741_v40 = vcombine.high %v2483_v53, %v2483_v53  ;;  %v2748_v61 = vrot.slane %v2483_v53, %v4400_v49  ;;  %v3380_v58 = vrot.slane %v3366_v39, %v4400_v49 }
 0x322   : > { %3441 = vst.msk [vmem:[%s5113_s14 + $0x68] sm:$0x3f] %vm3428_vm14, %v3166_v56  ;;  %v2935_v1 = vcombine.high %v2934_v6, %v2934_v6  ;;  %v3382_v31 = vcombine.low %v2927_v19, %v2934_v6  ;;  %v3175_v23 = vrot.slane %v3167_v35, %v4400_v49 }
 0x323   : > { %v2755_v52 = vrot.slane %v2741_v40, %v4400_v49  ;;  %v2756_v18 = vcombine.high %v2748_v61, %v2748_v61  ;;  %v3168_v27 = vcombine.low %v2740_v29, %v2748_v61  ;;  %v3381_v2 = vcombine.low %v3373_v22, %v3380_v58 }
 0x324   : > { %v3389_v48 = vrot.slane %v3382_v31, %v4400_v49  ;;  %v3396_v55 = vrot.slane %v2935_v1, %v4400_v49 }
 0x325   : > { %v2757_v7 = vcombine.high %v2755_v52, %v2755_v52  ;;  %v3182_v5 = vrot.slane %v3168_v27, %v4400_v49  ;;  %v3184_v38 = vcombine.low %v2756_v18, %v2755_v52  ;;  %3454 = vst.msk [vmem:[%s5113_s14 + $0xd0] sm:$0xff] %vm3426_vm13, %v3381_v2 }
 0x326   : > { %v3397_v10 = vcombine.low %v3389_v48, %v3396_v55 }
 0x327   : > { %v3183_v28 = vcombine.low %v3175_v23, %v3182_v5  ;;  %v3191_v26 = vrot.slane %v3184_v38, %v4400_v49  ;;  %v3198_v24 = vrot.slane %v2757_v7, %v4400_v49 }
 0x328   : > { %3455 = vst.msk [vmem:[%s5113_s14 + $0xd8] sm:$0x3f] %vm3428_vm14, %v3397_v10 }
 0x329   : > { %v3199_v43 = vcombine.low %v3191_v26, %v3198_v24  ;;  %3442 = vst.msk [vmem:[%s5113_s14 + $0x70] sm:$0xff] %vm3426_vm13, %v3183_v28 }
 0x32b   : > { %3443 = vst.msk [vmem:[%s5113_s14 + $0x78] sm:$0x3f] %vm3428_vm14, %v3199_v43 }
 0x32c PF: > { %s14_s15 = sadd.s32 1, %s3668_s15  }
 0x32d   : > { %p11_p4 = scmp.ge.s32.totalorder %s14_s15, 4  }
 0x32f   :  { %13 = sbr.rel (!%p11_p4) target bundleno = 1 (0x1), region = 66 }

</bundles_post_ra>
